<compile_context>
chip_gen: v5e
topology: v5e:2x2
jax: 0.10.0
libtpu: 0.0.40
codegen_flags: <defaults>
</compile_context>

<pallas_src>
import functools

import jax
import jax.numpy as jnp
from jax.experimental import pallas as pl
from jax.experimental.pallas import tpu as pltpu


# ---------------------------------------------------------------------------
# Fused kernel: input BN + num_layers x (GATConv + ReLU + BN + residual) + Linear
# ---------------------------------------------------------------------------
def _make_fused_kernel(num_layers, heads, head_dim):
    def kernel(x_ref, adj_ref, in_scale_ref, in_shift_ref, *rest):
        # rest = [w, att_mat, bias, scale, shift] * num_layers
        #        + [out_w_pad, out_b_pad]  (inputs)
        #        + [o_ref]                 (output)
        #        + [agg_ref]               (VMEM scratch, [N, H*D] f32)
        per_layer = 5
        layer_refs = rest[: per_layer * num_layers]
        out_w_ref = rest[per_layer * num_layers]
        out_b_ref = rest[per_layer * num_layers + 1]
        o_ref = rest[per_layer * num_layers + 2]
        agg_ref = rest[per_layer * num_layers + 3]

        # Additive edge mask, computed once and reused by every layer/head:
        # 0.0 for edges / self-loops, -1e30 for non-edges.
        neg_mask = (adj_ref[...].astype(jnp.float32) - 1.0) * jnp.float32(1e30)   # [N, N]

        # Input BatchNorm1d (eval, folded) + input Dropout (eval -> identity).
        h = x_ref[...] * in_scale_ref[...] + in_shift_ref[...]                     # [N, Fin]

        for layer in range(num_layers):
            (w_ref, att_ref, bias_ref,
             scale_ref, shift_ref) = layer_refs[per_layer * layer: per_layer * (layer + 1)]

            # Node linear (bf16 MXU inputs, f32 accumulation); cast to bf16 ONCE and
            # reuse for the logit matmul and every head's aggregation matmul.
            wx = jnp.dot(h.astype(jnp.bfloat16), w_ref[...],
                         preferred_element_type=jnp.float32)                        # [N, H*D]
            wx_bf16 = wx.astype(jnp.bfloat16)

            # Lane-dense attention logits via one small MXU push against the
            # block-diagonal att matrix: columns [0:H) = dst logits, [H:2H) = src.
            a_both = jnp.dot(wx_bf16, att_ref[...],
                             preferred_element_type=jnp.float32)                    # [N, 2H]
            a_both_t = jnp.transpose(a_both)                                        # [2H, N]

            for hh in range(heads):
                col = hh * head_dim
                a_dst_col = a_both[:, hh:hh + 1]                                    # [N, 1]
                a_src_row = a_both_t[heads + hh:heads + hh + 1, :]                  # [1, N]

                # e[i, j] = LeakyReLU(a_dst[i] + a_src[j], 0.2) + mask   (all f32).
                e = a_dst_col + a_src_row                                           # [N, N]
                e = jnp.maximum(e, 0.2 * e) + neg_mask

                # Softmax over sources; reciprocal goes to the EUP slot.
                m = jnp.max(e, axis=-1, keepdims=True)
                p = jnp.exp(e - m)                                                  # masked -> 0
                attn = p * pl.reciprocal(jnp.sum(p, axis=-1, keepdims=True),
                                         approx=True)

                # Aggregate this head directly into its lane-contiguous column slice
                # of the [N, H*D] scratch (no concatenate / relayout).
                agg_ref[:, col:col + head_dim] = jnp.dot(
                    attn.astype(jnp.bfloat16), wx_bf16[:, col:col + head_dim],
                    preferred_element_type=jnp.float32)

            out = agg_ref[...]                                                      # [N, H*D]
            out = jnp.maximum(out + bias_ref[...], 0.0)                             # bias + ReLU
            out = out * scale_ref[...] + shift_ref[...]                             # BN (eval); dropout=id
            h = out if layer == 0 else out + h                                      # residual from layer 1

        # Output Linear into a lane-dense padded slab (wrapper slices to out_dim).
        o_ref[...] = (jnp.dot(h.astype(jnp.bfloat16), out_w_ref[...],
                              preferred_element_type=jnp.float32) + out_b_ref[...])

    return kernel


# ---------------------------------------------------------------------------
# Forward pass wrapper (batch=None path -> per-node output [num_nodes, output_dim])
# ---------------------------------------------------------------------------
def forward(params, x, edge_index, *, heads, head_dim, num_layers, out_dim):
    n = x.shape[0]
    hidden = heads * head_dim
    out_pad = params["out_b_pad"].shape[-1]

    # adj[target, source] in {0,1} as int8; GATConv(add_self_loops=True) -> add identity.
    src, dst = edge_index[0], edge_index[1]
    adj = jnp.zeros((n, n), jnp.int8).at[dst, src].set(1)
    adj = jnp.maximum(adj, jnp.eye(n, dtype=jnp.int8))

    args = [x, adj, params["in_scale"], params["in_shift"]]
    for lp in params["layers"]:
        args += [lp["w"], lp["att_mat"], lp["bias"], lp["scale"], lp["shift"]]
    args += [params["out_w_pad"], params["out_b_pad"]]

    kernel = _make_fused_kernel(num_layers, heads, head_dim)
    vmem_spec = pl.BlockSpec(memory_space=pltpu.MemorySpace.VMEM)

    # Grid-less call: single invocation, whole arrays resident in VMEM, no
    # double-buffering of adj / weights.  vmem_limit left with headroom
    # (v6e can go ~96-100 MiB for larger N; v7x should tile instead).
    out_slab = pl.pallas_call(
        kernel,
        out_shape=jax.ShapeDtypeStruct((n, out_pad), jnp.float32),
        in_specs=[vmem_spec] * len(args),
        out_specs=vmem_spec,
        scratch_shapes=[pltpu.VMEM((n, hidden), jnp.float32)],
        compiler_params=pltpu.CompilerParams(vmem_limit_bytes=64 * 1024 * 1024),
    )(*args)
    return out_slab[:, :out_dim]


# ---------------------------------------------------------------------------
# Parameters (deterministic synthetic init, shapes mirror the PyTorch module)
# ---------------------------------------------------------------------------
def init_params(key, input_dim, hidden_dim, output_dim, num_layers, heads):
    head_dim = hidden_dim // heads
    eps = 1e-5
    eye_h = jnp.eye(heads, dtype=jnp.float32)
    params = {"layers": []}
    for layer in range(num_layers):
        fin = input_dim if layer == 0 else hidden_dim
        key, k_w, k_as, k_ad = jax.random.split(key, 4)
        # GATConv linear weight [Fin, H*D]; stored bf16 for the MXU.
        w = (jax.random.normal(k_w, (fin, hidden_dim), jnp.float32)
             * jnp.sqrt(2.0 / fin)).astype(jnp.bfloat16)
        att_src = jax.random.normal(k_as, (heads, head_dim), jnp.float32) * 0.1
        att_dst = jax.random.normal(k_ad, (heads, head_dim), jnp.float32) * 0.1
        # Block-diagonal attention matrix [H*D, 2H]: cols [0:H)=dst, [H:2H)=src.
        dst_mat = (att_dst[:, :, None] * eye_h[:, None, :]).reshape(hidden_dim, heads)
        src_mat = (att_src[:, :, None] * eye_h[:, None, :]).reshape(hidden_dim, heads)
        att_mat = jnp.concatenate([dst_mat, src_mat], axis=1).astype(jnp.bfloat16)
        bias = jnp.zeros((1, hidden_dim), jnp.float32)                   # GATConv bias init = 0
        # BatchNorm1d eval: gamma=1, beta=0, running_mean=0, running_var=1 -> fold.
        scale = jnp.full((1, hidden_dim), 1.0 / jnp.sqrt(1.0 + eps), jnp.float32)
        shift = jnp.zeros((1, hidden_dim), jnp.float32)
        params["layers"].append(dict(w=w, att_mat=att_mat, bias=bias,
                                     scale=scale, shift=shift))
    key, k_out = jax.random.split(key)
    out_w = (jax.random.normal(k_out, (hidden_dim, output_dim), jnp.float32)
             * jnp.sqrt(2.0 / hidden_dim))                               # He init (fan_in)
    out_pad = max(128, ((output_dim + 127) // 128) * 128)                # lane-dense store width
    params["out_w_pad"] = (jnp.zeros((hidden_dim, out_pad), jnp.float32)
                           .at[:, :output_dim].set(out_w).astype(jnp.bfloat16))
    params["out_b_pad"] = jnp.zeros((1, out_pad), jnp.float32)           # Linear bias init = 0
    # Input BatchNorm1d (eval), folded into scale/shift.
    params["in_scale"] = jnp.full((1, input_dim), 1.0 / jnp.sqrt(1.0 + eps), jnp.float32)
    params["in_shift"] = jnp.zeros((1, input_dim), jnp.float32)
    return params


# ---------------------------------------------------------------------------
if __name__ == "__main__":
    N, INPUT_DIM, HIDDEN_DIM, OUTPUT_DIM = 16, 32, 32, 2
    HEADS, NUM_LAYERS = 4, 3
    HEAD_DIM = HIDDEN_DIM // HEADS

    key = jax.random.PRNGKey(0)
    key, kx = jax.random.split(key)
    x = jax.random.normal(kx, (N, INPUT_DIM), jnp.float32)

    # Deterministic small graph: bidirectional ring + skip-2 edges.
    ar = jnp.arange(N)
    src = jnp.concatenate([ar, ar, ar])
    dst = jnp.concatenate([(ar + 1) % N, (ar - 1) % N, (ar + 2) % N])
    edge_index = jnp.stack([src, dst]).astype(jnp.int32)                 # [2, 48]

    params = init_params(jax.random.PRNGKey(0), INPUT_DIM, HIDDEN_DIM,
                         OUTPUT_DIM, NUM_LAYERS, HEADS)

    fwd = jax.jit(functools.partial(forward, heads=HEADS, head_dim=HEAD_DIM,
                                    num_layers=NUM_LAYERS, out_dim=OUTPUT_DIM))
    out = fwd(params, x, edge_index)
    jax.block_until_ready(out)

    assert out.shape == (N, OUTPUT_DIM), out.shape
    assert bool(jnp.all(jnp.isfinite(out)))
    print("KERNEL_OK")
</pallas_src>

<mosaic_0001>
module attributes {stable_mosaic.version = 11 : i64} {
  func.func @kernel(%arg0: memref<16x32xf32, #tpu.memory_space<vmem>>, %arg1: memref<16x16xi8, #tpu.memory_space<vmem>>, %arg2: memref<1x32xf32, #tpu.memory_space<vmem>>, %arg3: memref<1x32xf32, #tpu.memory_space<vmem>>, %arg4: memref<32x32xbf16, #tpu.memory_space<vmem>>, %arg5: memref<32x8xbf16, #tpu.memory_space<vmem>>, %arg6: memref<1x32xf32, #tpu.memory_space<vmem>>, %arg7: memref<1x32xf32, #tpu.memory_space<vmem>>, %arg8: memref<1x32xf32, #tpu.memory_space<vmem>>, %arg9: memref<32x32xbf16, #tpu.memory_space<vmem>>, %arg10: memref<32x8xbf16, #tpu.memory_space<vmem>>, %arg11: memref<1x32xf32, #tpu.memory_space<vmem>>, %arg12: memref<1x32xf32, #tpu.memory_space<vmem>>, %arg13: memref<1x32xf32, #tpu.memory_space<vmem>>, %arg14: memref<32x32xbf16, #tpu.memory_space<vmem>>, %arg15: memref<32x8xbf16, #tpu.memory_space<vmem>>, %arg16: memref<1x32xf32, #tpu.memory_space<vmem>>, %arg17: memref<1x32xf32, #tpu.memory_space<vmem>>, %arg18: memref<1x32xf32, #tpu.memory_space<vmem>>, %arg19: memref<32x128xbf16, #tpu.memory_space<vmem>>, %arg20: memref<1x128xf32, #tpu.memory_space<vmem>>, %arg21: memref<16x128xf32, #tpu.memory_space<vmem>>, %arg22: memref<16x32xf32, #tpu.memory_space<vmem>>) attributes {dimension_semantics = [], scalar_prefetch = 0 : i64, scratch_operands = 1 : i64, tpu.core_type = #tpu.core_type<tc>} {
    %c0 = arith.constant 0 : index
    %c0_0 = arith.constant 0 : index
    %0 = vector.load %arg1[%c0, %c0_0] : memref<16x16xi8, #tpu.memory_space<vmem>>, vector<16x16xi8>
    %1 = arith.sitofp %0 : vector<16x16xi8> to vector<16x16xf32>
    %cst = arith.constant 1.000000e+00 : f32
    %2 = vector.broadcast %cst : f32 to vector<16x16xf32>
    %3 = arith.subf %1, %2 : vector<16x16xf32>
    %cst_1 = arith.constant 1.000000e+30 : f32
    %4 = vector.broadcast %cst_1 : f32 to vector<16x16xf32>
    %5 = arith.mulf %3, %4 : vector<16x16xf32>
    %c0_2 = arith.constant 0 : index
    %c0_3 = arith.constant 0 : index
    %6 = vector.load %arg0[%c0_2, %c0_3] : memref<16x32xf32, #tpu.memory_space<vmem>>, vector<16x32xf32>
    %c0_4 = arith.constant 0 : index
    %c0_5 = arith.constant 0 : index
    %7 = vector.load %arg2[%c0_4, %c0_5] : memref<1x32xf32, #tpu.memory_space<vmem>>, vector<1x32xf32>
    %8 = vector.broadcast %7 : vector<1x32xf32> to vector<16x32xf32>
    %9 = arith.mulf %6, %8 : vector<16x32xf32>
    %c0_6 = arith.constant 0 : index
    %c0_7 = arith.constant 0 : index
    %10 = vector.load %arg3[%c0_6, %c0_7] : memref<1x32xf32, #tpu.memory_space<vmem>>, vector<1x32xf32>
    %11 = vector.broadcast %10 : vector<1x32xf32> to vector<16x32xf32>
    %12 = arith.addf %9, %11 : vector<16x32xf32>
    %13 = arith.truncf %12 : vector<16x32xf32> to vector<16x32xbf16>
    %c0_8 = arith.constant 0 : index
    %c0_9 = arith.constant 0 : index
    %14 = vector.load %arg4[%c0_8, %c0_9] : memref<32x32xbf16, #tpu.memory_space<vmem>>, vector<32x32xbf16>
    %cst_10 = arith.constant dense<0.000000e+00> : vector<16x32xf32>
    %15 = tpu.matmul %13, %14, %cst_10 {dimension_numbers = #tpu.dot_dimension_numbers<[1], [0], [0], [1], [0, 0, 1, 1], [], []>} : vector<16x32xbf16>, vector<32x32xbf16>, vector<16x32xf32> -> vector<16x32xf32>
    %16 = arith.truncf %15 : vector<16x32xf32> to vector<16x32xbf16>
    %c0_11 = arith.constant 0 : index
    %c0_12 = arith.constant 0 : index
    %17 = vector.load %arg5[%c0_11, %c0_12] : memref<32x8xbf16, #tpu.memory_space<vmem>>, vector<32x8xbf16>
    %cst_13 = arith.constant dense<0.000000e+00> : vector<16x8xf32>
    %18 = tpu.matmul %16, %17, %cst_13 {dimension_numbers = #tpu.dot_dimension_numbers<[1], [0], [0], [1], [0, 0, 1, 1], [], []>} : vector<16x32xbf16>, vector<32x8xbf16>, vector<16x8xf32> -> vector<16x8xf32>
    %19 = tpu.transpose %18, [1, 0] : vector<16x8xf32> -> vector<8x16xf32>
    %20 = vector.extract_strided_slice %18 {offsets = [0, 0], sizes = [16, 1], strides = [1, 1]} : vector<16x8xf32> to vector<16x1xf32>
    %21 = vector.extract_strided_slice %19 {offsets = [4, 0], sizes = [1, 16], strides = [1, 1]} : vector<8x16xf32> to vector<1x16xf32>
    %22 = vector.broadcast %20 : vector<16x1xf32> to vector<16x16xf32>
    %23 = vector.broadcast %21 : vector<1x16xf32> to vector<16x16xf32>
    %24 = arith.addf %22, %23 : vector<16x16xf32>
    %cst_14 = arith.constant 2.000000e-01 : f32
    %25 = vector.broadcast %cst_14 : f32 to vector<16x16xf32>
    %26 = arith.mulf %25, %24 : vector<16x16xf32>
    %27 = arith.maximumf %24, %26 : vector<16x16xf32>
    %28 = arith.addf %27, %5 : vector<16x16xf32>
    %cst_15 = arith.constant dense<0xFF800000> : vector<16xf32>
    %29 = vector.multi_reduction <maximumf>, %28, %cst_15 [1] : vector<16x16xf32> to vector<16xf32>
    %30 = vector.shape_cast %29 : vector<16xf32> to vector<16x1xf32>
    %31 = vector.broadcast %30 : vector<16x1xf32> to vector<16x16xf32>
    %32 = arith.subf %28, %31 : vector<16x16xf32>
    %33 = math.exp %32 : vector<16x16xf32>
    %cst_16 = arith.constant dense<0.000000e+00> : vector<16xf32>
    %34 = vector.multi_reduction <add>, %33, %cst_16 [1] : vector<16x16xf32> to vector<16xf32>
    %35 = vector.shape_cast %34 : vector<16xf32> to vector<16x1xf32>
    %36 = tpu.reciprocal %35 {approx = true} : vector<16x1xf32> -> vector<16x1xf32>
    %37 = vector.broadcast %36 : vector<16x1xf32> to vector<16x16xf32>
    %38 = arith.mulf %33, %37 : vector<16x16xf32>
    %39 = arith.truncf %38 : vector<16x16xf32> to vector<16x16xbf16>
    %40 = vector.extract_strided_slice %16 {offsets = [0, 0], sizes = [16, 8], strides = [1, 1]} : vector<16x32xbf16> to vector<16x8xbf16>
    %cst_17 = arith.constant dense<0.000000e+00> : vector<16x8xf32>
    %41 = tpu.matmul %39, %40, %cst_17 {dimension_numbers = #tpu.dot_dimension_numbers<[1], [0], [0], [1], [0, 0, 1, 1], [], []>} : vector<16x16xbf16>, vector<16x8xbf16>, vector<16x8xf32> -> vector<16x8xf32>
    %c0_18 = arith.constant 0 : index
    %c0_19 = arith.constant 0 : index
    %42 = vector.load %arg22[%c0_18, %c0_19] : memref<16x32xf32, #tpu.memory_space<vmem>>, vector<16x8xf32>
    tpu.vector_store %arg22[%c0_18, %c0_19], %41 {strides = array<i32>} : memref<16x32xf32, #tpu.memory_space<vmem>>, vector<16x8xf32>,
    %43 = vector.extract_strided_slice %18 {offsets = [0, 1], sizes = [16, 1], strides = [1, 1]} : vector<16x8xf32> to vector<16x1xf32>
    %44 = vector.extract_strided_slice %19 {offsets = [5, 0], sizes = [1, 16], strides = [1, 1]} : vector<8x16xf32> to vector<1x16xf32>
    %45 = vector.broadcast %43 : vector<16x1xf32> to vector<16x16xf32>
    %46 = vector.broadcast %44 : vector<1x16xf32> to vector<16x16xf32>
    %47 = arith.addf %45, %46 : vector<16x16xf32>
    %cst_20 = arith.constant 2.000000e-01 : f32
    %48 = vector.broadcast %cst_20 : f32 to vector<16x16xf32>
    %49 = arith.mulf %48, %47 : vector<16x16xf32>
    %50 = arith.maximumf %47, %49 : vector<16x16xf32>
    %51 = arith.addf %50, %5 : vector<16x16xf32>
    %cst_21 = arith.constant dense<0xFF800000> : vector<16xf32>
    %52 = vector.multi_reduction <maximumf>, %51, %cst_21 [1] : vector<16x16xf32> to vector<16xf32>
    %53 = vector.shape_cast %52 : vector<16xf32> to vector<16x1xf32>
    %54 = vector.broadcast %53 : vector<16x1xf32> to vector<16x16xf32>
    %55 = arith.subf %51, %54 : vector<16x16xf32>
    %56 = math.exp %55 : vector<16x16xf32>
    %cst_22 = arith.constant dense<0.000000e+00> : vector<16xf32>
    %57 = vector.multi_reduction <add>, %56, %cst_22 [1] : vector<16x16xf32> to vector<16xf32>
    %58 = vector.shape_cast %57 : vector<16xf32> to vector<16x1xf32>
    %59 = tpu.reciprocal %58 {approx = true} : vector<16x1xf32> -> vector<16x1xf32>
    %60 = vector.broadcast %59 : vector<16x1xf32> to vector<16x16xf32>
    %61 = arith.mulf %56, %60 : vector<16x16xf32>
    %62 = arith.truncf %61 : vector<16x16xf32> to vector<16x16xbf16>
    %63 = vector.extract_strided_slice %16 {offsets = [0, 8], sizes = [16, 8], strides = [1, 1]} : vector<16x32xbf16> to vector<16x8xbf16>
    %cst_23 = arith.constant dense<0.000000e+00> : vector<16x8xf32>
    %64 = tpu.matmul %62, %63, %cst_23 {dimension_numbers = #tpu.dot_dimension_numbers<[1], [0], [0], [1], [0, 0, 1, 1], [], []>} : vector<16x16xbf16>, vector<16x8xbf16>, vector<16x8xf32> -> vector<16x8xf32>
    %c0_24 = arith.constant 0 : index
    %c8 = arith.constant 8 : index
    %65 = vector.load %arg22[%c0_24, %c8] : memref<16x32xf32, #tpu.memory_space<vmem>>, vector<16x8xf32>
    tpu.vector_store %arg22[%c0_24, %c8], %64 {strides = array<i32>} : memref<16x32xf32, #tpu.memory_space<vmem>>, vector<16x8xf32>,
    %66 = vector.extract_strided_slice %18 {offsets = [0, 2], sizes = [16, 1], strides = [1, 1]} : vector<16x8xf32> to vector<16x1xf32>
    %67 = vector.extract_strided_slice %19 {offsets = [6, 0], sizes = [1, 16], strides = [1, 1]} : vector<8x16xf32> to vector<1x16xf32>
    %68 = vector.broadcast %66 : vector<16x1xf32> to vector<16x16xf32>
    %69 = vector.broadcast %67 : vector<1x16xf32> to vector<16x16xf32>
    %70 = arith.addf %68, %69 : vector<16x16xf32>
    %cst_25 = arith.constant 2.000000e-01 : f32
    %71 = vector.broadcast %cst_25 : f32 to vector<16x16xf32>
    %72 = arith.mulf %71, %70 : vector<16x16xf32>
    %73 = arith.maximumf %70, %72 : vector<16x16xf32>
    %74 = arith.addf %73, %5 : vector<16x16xf32>
    %cst_26 = arith.constant dense<0xFF800000> : vector<16xf32>
    %75 = vector.multi_reduction <maximumf>, %74, %cst_26 [1] : vector<16x16xf32> to vector<16xf32>
    %76 = vector.shape_cast %75 : vector<16xf32> to vector<16x1xf32>
    %77 = vector.broadcast %76 : vector<16x1xf32> to vector<16x16xf32>
    %78 = arith.subf %74, %77 : vector<16x16xf32>
    %79 = math.exp %78 : vector<16x16xf32>
    %cst_27 = arith.constant dense<0.000000e+00> : vector<16xf32>
    %80 = vector.multi_reduction <add>, %79, %cst_27 [1] : vector<16x16xf32> to vector<16xf32>
    %81 = vector.shape_cast %80 : vector<16xf32> to vector<16x1xf32>
    %82 = tpu.reciprocal %81 {approx = true} : vector<16x1xf32> -> vector<16x1xf32>
    %83 = vector.broadcast %82 : vector<16x1xf32> to vector<16x16xf32>
    %84 = arith.mulf %79, %83 : vector<16x16xf32>
    %85 = arith.truncf %84 : vector<16x16xf32> to vector<16x16xbf16>
    %86 = vector.extract_strided_slice %16 {offsets = [0, 16], sizes = [16, 8], strides = [1, 1]} : vector<16x32xbf16> to vector<16x8xbf16>
    %cst_28 = arith.constant dense<0.000000e+00> : vector<16x8xf32>
    %87 = tpu.matmul %85, %86, %cst_28 {dimension_numbers = #tpu.dot_dimension_numbers<[1], [0], [0], [1], [0, 0, 1, 1], [], []>} : vector<16x16xbf16>, vector<16x8xbf16>, vector<16x8xf32> -> vector<16x8xf32>
    %c0_29 = arith.constant 0 : index
    %c16 = arith.constant 16 : index
    %88 = vector.load %arg22[%c0_29, %c16] : memref<16x32xf32, #tpu.memory_space<vmem>>, vector<16x8xf32>
    tpu.vector_store %arg22[%c0_29, %c16], %87 {strides = array<i32>} : memref<16x32xf32, #tpu.memory_space<vmem>>, vector<16x8xf32>,
    %89 = vector.extract_strided_slice %18 {offsets = [0, 3], sizes = [16, 1], strides = [1, 1]} : vector<16x8xf32> to vector<16x1xf32>
    %90 = vector.extract_strided_slice %19 {offsets = [7, 0], sizes = [1, 16], strides = [1, 1]} : vector<8x16xf32> to vector<1x16xf32>
    %91 = vector.broadcast %89 : vector<16x1xf32> to vector<16x16xf32>
    %92 = vector.broadcast %90 : vector<1x16xf32> to vector<16x16xf32>
    %93 = arith.addf %91, %92 : vector<16x16xf32>
    %cst_30 = arith.constant 2.000000e-01 : f32
    %94 = vector.broadcast %cst_30 : f32 to vector<16x16xf32>
    %95 = arith.mulf %94, %93 : vector<16x16xf32>
    %96 = arith.maximumf %93, %95 : vector<16x16xf32>
    %97 = arith.addf %96, %5 : vector<16x16xf32>
    %cst_31 = arith.constant dense<0xFF800000> : vector<16xf32>
    %98 = vector.multi_reduction <maximumf>, %97, %cst_31 [1] : vector<16x16xf32> to vector<16xf32>
    %99 = vector.shape_cast %98 : vector<16xf32> to vector<16x1xf32>
    %100 = vector.broadcast %99 : vector<16x1xf32> to vector<16x16xf32>
    %101 = arith.subf %97, %100 : vector<16x16xf32>
    %102 = math.exp %101 : vector<16x16xf32>
    %cst_32 = arith.constant dense<0.000000e+00> : vector<16xf32>
    %103 = vector.multi_reduction <add>, %102, %cst_32 [1] : vector<16x16xf32> to vector<16xf32>
    %104 = vector.shape_cast %103 : vector<16xf32> to vector<16x1xf32>
    %105 = tpu.reciprocal %104 {approx = true} : vector<16x1xf32> -> vector<16x1xf32>
    %106 = vector.broadcast %105 : vector<16x1xf32> to vector<16x16xf32>
    %107 = arith.mulf %102, %106 : vector<16x16xf32>
    %108 = arith.truncf %107 : vector<16x16xf32> to vector<16x16xbf16>
    %109 = vector.extract_strided_slice %16 {offsets = [0, 24], sizes = [16, 8], strides = [1, 1]} : vector<16x32xbf16> to vector<16x8xbf16>
    %cst_33 = arith.constant dense<0.000000e+00> : vector<16x8xf32>
    %110 = tpu.matmul %108, %109, %cst_33 {dimension_numbers = #tpu.dot_dimension_numbers<[1], [0], [0], [1], [0, 0, 1, 1], [], []>} : vector<16x16xbf16>, vector<16x8xbf16>, vector<16x8xf32> -> vector<16x8xf32>
    %c0_34 = arith.constant 0 : index
    %c24 = arith.constant 24 : index
    %111 = vector.load %arg22[%c0_34, %c24] : memref<16x32xf32, #tpu.memory_space<vmem>>, vector<16x8xf32>
    tpu.vector_store %arg22[%c0_34, %c24], %110 {strides = array<i32>} : memref<16x32xf32, #tpu.memory_space<vmem>>, vector<16x8xf32>,
    %c0_35 = arith.constant 0 : index
    %c0_36 = arith.constant 0 : index
    %112 = vector.load %arg22[%c0_35, %c0_36] : memref<16x32xf32, #tpu.memory_space<vmem>>, vector<16x32xf32>
    %c0_37 = arith.constant 0 : index
    %c0_38 = arith.constant 0 : index
    %113 = vector.load %arg6[%c0_37, %c0_38] : memref<1x32xf32, #tpu.memory_space<vmem>>, vector<1x32xf32>
    %114 = vector.broadcast %113 : vector<1x32xf32> to vector<16x32xf32>
    %115 = arith.addf %112, %114 : vector<16x32xf32>
    %cst_39 = arith.constant 0.000000e+00 : f32
    %116 = vector.broadcast %cst_39 : f32 to vector<16x32xf32>
    %117 = arith.maximumf %115, %116 : vector<16x32xf32>
    %c0_40 = arith.constant 0 : index
    %c0_41 = arith.constant 0 : index
    %118 = vector.load %arg7[%c0_40, %c0_41] : memref<1x32xf32, #tpu.memory_space<vmem>>, vector<1x32xf32>
    %119 = vector.broadcast %118 : vector<1x32xf32> to vector<16x32xf32>
    %120 = arith.mulf %117, %119 : vector<16x32xf32>
    %c0_42 = arith.constant 0 : index
    %c0_43 = arith.constant 0 : index
    %121 = vector.load %arg8[%c0_42, %c0_43] : memref<1x32xf32, #tpu.memory_space<vmem>>, vector<1x32xf32>
    %122 = vector.broadcast %121 : vector<1x32xf32> to vector<16x32xf32>
    %123 = arith.addf %120, %122 : vector<16x32xf32>
    %124 = arith.truncf %123 : vector<16x32xf32> to vector<16x32xbf16>
    %c0_44 = arith.constant 0 : index
    %c0_45 = arith.constant 0 : index
    %125 = vector.load %arg9[%c0_44, %c0_45] : memref<32x32xbf16, #tpu.memory_space<vmem>>, vector<32x32xbf16>
    %cst_46 = arith.constant dense<0.000000e+00> : vector<16x32xf32>
    %126 = tpu.matmul %124, %125, %cst_46 {dimension_numbers = #tpu.dot_dimension_numbers<[1], [0], [0], [1], [0, 0, 1, 1], [], []>} : vector<16x32xbf16>, vector<32x32xbf16>, vector<16x32xf32> -> vector<16x32xf32>
    %127 = arith.truncf %126 : vector<16x32xf32> to vector<16x32xbf16>
    %c0_47 = arith.constant 0 : index
    %c0_48 = arith.constant 0 : index
    %128 = vector.load %arg10[%c0_47, %c0_48] : memref<32x8xbf16, #tpu.memory_space<vmem>>, vector<32x8xbf16>
    %cst_49 = arith.constant dense<0.000000e+00> : vector<16x8xf32>
    %129 = tpu.matmul %127, %128, %cst_49 {dimension_numbers = #tpu.dot_dimension_numbers<[1], [0], [0], [1], [0, 0, 1, 1], [], []>} : vector<16x32xbf16>, vector<32x8xbf16>, vector<16x8xf32> -> vector<16x8xf32>
    %130 = tpu.transpose %129, [1, 0] : vector<16x8xf32> -> vector<8x16xf32>
    %131 = vector.extract_strided_slice %129 {offsets = [0, 0], sizes = [16, 1], strides = [1, 1]} : vector<16x8xf32> to vector<16x1xf32>
    %132 = vector.extract_strided_slice %130 {offsets = [4, 0], sizes = [1, 16], strides = [1, 1]} : vector<8x16xf32> to vector<1x16xf32>
    %133 = vector.broadcast %131 : vector<16x1xf32> to vector<16x16xf32>
    %134 = vector.broadcast %132 : vector<1x16xf32> to vector<16x16xf32>
    %135 = arith.addf %133, %134 : vector<16x16xf32>
    %cst_50 = arith.constant 2.000000e-01 : f32
    %136 = vector.broadcast %cst_50 : f32 to vector<16x16xf32>
    %137 = arith.mulf %136, %135 : vector<16x16xf32>
    %138 = arith.maximumf %135, %137 : vector<16x16xf32>
    %139 = arith.addf %138, %5 : vector<16x16xf32>
    %cst_51 = arith.constant dense<0xFF800000> : vector<16xf32>
    %140 = vector.multi_reduction <maximumf>, %139, %cst_51 [1] : vector<16x16xf32> to vector<16xf32>
    %141 = vector.shape_cast %140 : vector<16xf32> to vector<16x1xf32>
    %142 = vector.broadcast %141 : vector<16x1xf32> to vector<16x16xf32>
    %143 = arith.subf %139, %142 : vector<16x16xf32>
    %144 = math.exp %143 : vector<16x16xf32>
    %cst_52 = arith.constant dense<0.000000e+00> : vector<16xf32>
    %145 = vector.multi_reduction <add>, %144, %cst_52 [1] : vector<16x16xf32> to vector<16xf32>
    %146 = vector.shape_cast %145 : vector<16xf32> to vector<16x1xf32>
    %147 = tpu.reciprocal %146 {approx = true} : vector<16x1xf32> -> vector<16x1xf32>
    %148 = vector.broadcast %147 : vector<16x1xf32> to vector<16x16xf32>
    %149 = arith.mulf %144, %148 : vector<16x16xf32>
    %150 = arith.truncf %149 : vector<16x16xf32> to vector<16x16xbf16>
    %151 = vector.extract_strided_slice %127 {offsets = [0, 0], sizes = [16, 8], strides = [1, 1]} : vector<16x32xbf16> to vector<16x8xbf16>
    %cst_53 = arith.constant dense<0.000000e+00> : vector<16x8xf32>
    %152 = tpu.matmul %150, %151, %cst_53 {dimension_numbers = #tpu.dot_dimension_numbers<[1], [0], [0], [1], [0, 0, 1, 1], [], []>} : vector<16x16xbf16>, vector<16x8xbf16>, vector<16x8xf32> -> vector<16x8xf32>
    %c0_54 = arith.constant 0 : index
    %c0_55 = arith.constant 0 : index
    %153 = vector.load %arg22[%c0_54, %c0_55] : memref<16x32xf32, #tpu.memory_space<vmem>>, vector<16x8xf32>
    tpu.vector_store %arg22[%c0_54, %c0_55], %152 {strides = array<i32>} : memref<16x32xf32, #tpu.memory_space<vmem>>, vector<16x8xf32>,
    %154 = vector.extract_strided_slice %129 {offsets = [0, 1], sizes = [16, 1], strides = [1, 1]} : vector<16x8xf32> to vector<16x1xf32>
    %155 = vector.extract_strided_slice %130 {offsets = [5, 0], sizes = [1, 16], strides = [1, 1]} : vector<8x16xf32> to vector<1x16xf32>
    %156 = vector.broadcast %154 : vector<16x1xf32> to vector<16x16xf32>
    %157 = vector.broadcast %155 : vector<1x16xf32> to vector<16x16xf32>
    %158 = arith.addf %156, %157 : vector<16x16xf32>
    %cst_56 = arith.constant 2.000000e-01 : f32
    %159 = vector.broadcast %cst_56 : f32 to vector<16x16xf32>
    %160 = arith.mulf %159, %158 : vector<16x16xf32>
    %161 = arith.maximumf %158, %160 : vector<16x16xf32>
    %162 = arith.addf %161, %5 : vector<16x16xf32>
    %cst_57 = arith.constant dense<0xFF800000> : vector<16xf32>
    %163 = vector.multi_reduction <maximumf>, %162, %cst_57 [1] : vector<16x16xf32> to vector<16xf32>
    %164 = vector.shape_cast %163 : vector<16xf32> to vector<16x1xf32>
    %165 = vector.broadcast %164 : vector<16x1xf32> to vector<16x16xf32>
    %166 = arith.subf %162, %165 : vector<16x16xf32>
    %167 = math.exp %166 : vector<16x16xf32>
    %cst_58 = arith.constant dense<0.000000e+00> : vector<16xf32>
    %168 = vector.multi_reduction <add>, %167, %cst_58 [1] : vector<16x16xf32> to vector<16xf32>
    %169 = vector.shape_cast %168 : vector<16xf32> to vector<16x1xf32>
    %170 = tpu.reciprocal %169 {approx = true} : vector<16x1xf32> -> vector<16x1xf32>
    %171 = vector.broadcast %170 : vector<16x1xf32> to vector<16x16xf32>
    %172 = arith.mulf %167, %171 : vector<16x16xf32>
    %173 = arith.truncf %172 : vector<16x16xf32> to vector<16x16xbf16>
    %174 = vector.extract_strided_slice %127 {offsets = [0, 8], sizes = [16, 8], strides = [1, 1]} : vector<16x32xbf16> to vector<16x8xbf16>
    %cst_59 = arith.constant dense<0.000000e+00> : vector<16x8xf32>
    %175 = tpu.matmul %173, %174, %cst_59 {dimension_numbers = #tpu.dot_dimension_numbers<[1], [0], [0], [1], [0, 0, 1, 1], [], []>} : vector<16x16xbf16>, vector<16x8xbf16>, vector<16x8xf32> -> vector<16x8xf32>
    %c0_60 = arith.constant 0 : index
    %c8_61 = arith.constant 8 : index
    %176 = vector.load %arg22[%c0_60, %c8_61] : memref<16x32xf32, #tpu.memory_space<vmem>>, vector<16x8xf32>
    tpu.vector_store %arg22[%c0_60, %c8_61], %175 {strides = array<i32>} : memref<16x32xf32, #tpu.memory_space<vmem>>, vector<16x8xf32>,
    %177 = vector.extract_strided_slice %129 {offsets = [0, 2], sizes = [16, 1], strides = [1, 1]} : vector<16x8xf32> to vector<16x1xf32>
    %178 = vector.extract_strided_slice %130 {offsets = [6, 0], sizes = [1, 16], strides = [1, 1]} : vector<8x16xf32> to vector<1x16xf32>
    %179 = vector.broadcast %177 : vector<16x1xf32> to vector<16x16xf32>
    %180 = vector.broadcast %178 : vector<1x16xf32> to vector<16x16xf32>
    %181 = arith.addf %179, %180 : vector<16x16xf32>
    %cst_62 = arith.constant 2.000000e-01 : f32
    %182 = vector.broadcast %cst_62 : f32 to vector<16x16xf32>
    %183 = arith.mulf %182, %181 : vector<16x16xf32>
    %184 = arith.maximumf %181, %183 : vector<16x16xf32>
    %185 = arith.addf %184, %5 : vector<16x16xf32>
    %cst_63 = arith.constant dense<0xFF800000> : vector<16xf32>
    %186 = vector.multi_reduction <maximumf>, %185, %cst_63 [1] : vector<16x16xf32> to vector<16xf32>
    %187 = vector.shape_cast %186 : vector<16xf32> to vector<16x1xf32>
    %188 = vector.broadcast %187 : vector<16x1xf32> to vector<16x16xf32>
    %189 = arith.subf %185, %188 : vector<16x16xf32>
    %190 = math.exp %189 : vector<16x16xf32>
    %cst_64 = arith.constant dense<0.000000e+00> : vector<16xf32>
    %191 = vector.multi_reduction <add>, %190, %cst_64 [1] : vector<16x16xf32> to vector<16xf32>
    %192 = vector.shape_cast %191 : vector<16xf32> to vector<16x1xf32>
    %193 = tpu.reciprocal %192 {approx = true} : vector<16x1xf32> -> vector<16x1xf32>
    %194 = vector.broadcast %193 : vector<16x1xf32> to vector<16x16xf32>
    %195 = arith.mulf %190, %194 : vector<16x16xf32>
    %196 = arith.truncf %195 : vector<16x16xf32> to vector<16x16xbf16>
    %197 = vector.extract_strided_slice %127 {offsets = [0, 16], sizes = [16, 8], strides = [1, 1]} : vector<16x32xbf16> to vector<16x8xbf16>
    %cst_65 = arith.constant dense<0.000000e+00> : vector<16x8xf32>
    %198 = tpu.matmul %196, %197, %cst_65 {dimension_numbers = #tpu.dot_dimension_numbers<[1], [0], [0], [1], [0, 0, 1, 1], [], []>} : vector<16x16xbf16>, vector<16x8xbf16>, vector<16x8xf32> -> vector<16x8xf32>
    %c0_66 = arith.constant 0 : index
    %c16_67 = arith.constant 16 : index
    %199 = vector.load %arg22[%c0_66, %c16_67] : memref<16x32xf32, #tpu.memory_space<vmem>>, vector<16x8xf32>
    tpu.vector_store %arg22[%c0_66, %c16_67], %198 {strides = array<i32>} : memref<16x32xf32, #tpu.memory_space<vmem>>, vector<16x8xf32>,
    %200 = vector.extract_strided_slice %129 {offsets = [0, 3], sizes = [16, 1], strides = [1, 1]} : vector<16x8xf32> to vector<16x1xf32>
    %201 = vector.extract_strided_slice %130 {offsets = [7, 0], sizes = [1, 16], strides = [1, 1]} : vector<8x16xf32> to vector<1x16xf32>
    %202 = vector.broadcast %200 : vector<16x1xf32> to vector<16x16xf32>
    %203 = vector.broadcast %201 : vector<1x16xf32> to vector<16x16xf32>
    %204 = arith.addf %202, %203 : vector<16x16xf32>
    %cst_68 = arith.constant 2.000000e-01 : f32
    %205 = vector.broadcast %cst_68 : f32 to vector<16x16xf32>
    %206 = arith.mulf %205, %204 : vector<16x16xf32>
    %207 = arith.maximumf %204, %206 : vector<16x16xf32>
    %208 = arith.addf %207, %5 : vector<16x16xf32>
    %cst_69 = arith.constant dense<0xFF800000> : vector<16xf32>
    %209 = vector.multi_reduction <maximumf>, %208, %cst_69 [1] : vector<16x16xf32> to vector<16xf32>
    %210 = vector.shape_cast %209 : vector<16xf32> to vector<16x1xf32>
    %211 = vector.broadcast %210 : vector<16x1xf32> to vector<16x16xf32>
    %212 = arith.subf %208, %211 : vector<16x16xf32>
    %213 = math.exp %212 : vector<16x16xf32>
    %cst_70 = arith.constant dense<0.000000e+00> : vector<16xf32>
    %214 = vector.multi_reduction <add>, %213, %cst_70 [1] : vector<16x16xf32> to vector<16xf32>
    %215 = vector.shape_cast %214 : vector<16xf32> to vector<16x1xf32>
    %216 = tpu.reciprocal %215 {approx = true} : vector<16x1xf32> -> vector<16x1xf32>
    %217 = vector.broadcast %216 : vector<16x1xf32> to vector<16x16xf32>
    %218 = arith.mulf %213, %217 : vector<16x16xf32>
    %219 = arith.truncf %218 : vector<16x16xf32> to vector<16x16xbf16>
    %220 = vector.extract_strided_slice %127 {offsets = [0, 24], sizes = [16, 8], strides = [1, 1]} : vector<16x32xbf16> to vector<16x8xbf16>
    %cst_71 = arith.constant dense<0.000000e+00> : vector<16x8xf32>
    %221 = tpu.matmul %219, %220, %cst_71 {dimension_numbers = #tpu.dot_dimension_numbers<[1], [0], [0], [1], [0, 0, 1, 1], [], []>} : vector<16x16xbf16>, vector<16x8xbf16>, vector<16x8xf32> -> vector<16x8xf32>
    %c0_72 = arith.constant 0 : index
    %c24_73 = arith.constant 24 : index
    %222 = vector.load %arg22[%c0_72, %c24_73] : memref<16x32xf32, #tpu.memory_space<vmem>>, vector<16x8xf32>
    tpu.vector_store %arg22[%c0_72, %c24_73], %221 {strides = array<i32>} : memref<16x32xf32, #tpu.memory_space<vmem>>, vector<16x8xf32>,
    %c0_74 = arith.constant 0 : index
    %c0_75 = arith.constant 0 : index
    %223 = vector.load %arg22[%c0_74, %c0_75] : memref<16x32xf32, #tpu.memory_space<vmem>>, vector<16x32xf32>
    %c0_76 = arith.constant 0 : index
    %c0_77 = arith.constant 0 : index
    %224 = vector.load %arg11[%c0_76, %c0_77] : memref<1x32xf32, #tpu.memory_space<vmem>>, vector<1x32xf32>
    %225 = vector.broadcast %224 : vector<1x32xf32> to vector<16x32xf32>
    %226 = arith.addf %223, %225 : vector<16x32xf32>
    %cst_78 = arith.constant 0.000000e+00 : f32
    %227 = vector.broadcast %cst_78 : f32 to vector<16x32xf32>
    %228 = arith.maximumf %226, %227 : vector<16x32xf32>
    %c0_79 = arith.constant 0 : index
    %c0_80 = arith.constant 0 : index
    %229 = vector.load %arg12[%c0_79, %c0_80] : memref<1x32xf32, #tpu.memory_space<vmem>>, vector<1x32xf32>
    %230 = vector.broadcast %229 : vector<1x32xf32> to vector<16x32xf32>
    %231 = arith.mulf %228, %230 : vector<16x32xf32>
    %c0_81 = arith.constant 0 : index
    %c0_82 = arith.constant 0 : index
    %232 = vector.load %arg13[%c0_81, %c0_82] : memref<1x32xf32, #tpu.memory_space<vmem>>, vector<1x32xf32>
    %233 = vector.broadcast %232 : vector<1x32xf32> to vector<16x32xf32>
    %234 = arith.addf %231, %233 : vector<16x32xf32>
    %235 = arith.addf %234, %123 : vector<16x32xf32>
    %236 = arith.truncf %235 : vector<16x32xf32> to vector<16x32xbf16>
    %c0_83 = arith.constant 0 : index
    %c0_84 = arith.constant 0 : index
    %237 = vector.load %arg14[%c0_83, %c0_84] : memref<32x32xbf16, #tpu.memory_space<vmem>>, vector<32x32xbf16>
    %cst_85 = arith.constant dense<0.000000e+00> : vector<16x32xf32>
    %238 = tpu.matmul %236, %237, %cst_85 {dimension_numbers = #tpu.dot_dimension_numbers<[1], [0], [0], [1], [0, 0, 1, 1], [], []>} : vector<16x32xbf16>, vector<32x32xbf16>, vector<16x32xf32> -> vector<16x32xf32>
    %239 = arith.truncf %238 : vector<16x32xf32> to vector<16x32xbf16>
    %c0_86 = arith.constant 0 : index
    %c0_87 = arith.constant 0 : index
    %240 = vector.load %arg15[%c0_86, %c0_87] : memref<32x8xbf16, #tpu.memory_space<vmem>>, vector<32x8xbf16>
    %cst_88 = arith.constant dense<0.000000e+00> : vector<16x8xf32>
    %241 = tpu.matmul %239, %240, %cst_88 {dimension_numbers = #tpu.dot_dimension_numbers<[1], [0], [0], [1], [0, 0, 1, 1], [], []>} : vector<16x32xbf16>, vector<32x8xbf16>, vector<16x8xf32> -> vector<16x8xf32>
    %242 = tpu.transpose %241, [1, 0] : vector<16x8xf32> -> vector<8x16xf32>
    %243 = vector.extract_strided_slice %241 {offsets = [0, 0], sizes = [16, 1], strides = [1, 1]} : vector<16x8xf32> to vector<16x1xf32>
    %244 = vector.extract_strided_slice %242 {offsets = [4, 0], sizes = [1, 16], strides = [1, 1]} : vector<8x16xf32> to vector<1x16xf32>
    %245 = vector.broadcast %243 : vector<16x1xf32> to vector<16x16xf32>
    %246 = vector.broadcast %244 : vector<1x16xf32> to vector<16x16xf32>
    %247 = arith.addf %245, %246 : vector<16x16xf32>
    %cst_89 = arith.constant 2.000000e-01 : f32
    %248 = vector.broadcast %cst_89 : f32 to vector<16x16xf32>
    %249 = arith.mulf %248, %247 : vector<16x16xf32>
    %250 = arith.maximumf %247, %249 : vector<16x16xf32>
    %251 = arith.addf %250, %5 : vector<16x16xf32>
    %cst_90 = arith.constant dense<0xFF800000> : vector<16xf32>
    %252 = vector.multi_reduction <maximumf>, %251, %cst_90 [1] : vector<16x16xf32> to vector<16xf32>
    %253 = vector.shape_cast %252 : vector<16xf32> to vector<16x1xf32>
    %254 = vector.broadcast %253 : vector<16x1xf32> to vector<16x16xf32>
    %255 = arith.subf %251, %254 : vector<16x16xf32>
    %256 = math.exp %255 : vector<16x16xf32>
    %cst_91 = arith.constant dense<0.000000e+00> : vector<16xf32>
    %257 = vector.multi_reduction <add>, %256, %cst_91 [1] : vector<16x16xf32> to vector<16xf32>
    %258 = vector.shape_cast %257 : vector<16xf32> to vector<16x1xf32>
    %259 = tpu.reciprocal %258 {approx = true} : vector<16x1xf32> -> vector<16x1xf32>
    %260 = vector.broadcast %259 : vector<16x1xf32> to vector<16x16xf32>
    %261 = arith.mulf %256, %260 : vector<16x16xf32>
    %262 = arith.truncf %261 : vector<16x16xf32> to vector<16x16xbf16>
    %263 = vector.extract_strided_slice %239 {offsets = [0, 0], sizes = [16, 8], strides = [1, 1]} : vector<16x32xbf16> to vector<16x8xbf16>
    %cst_92 = arith.constant dense<0.000000e+00> : vector<16x8xf32>
    %264 = tpu.matmul %262, %263, %cst_92 {dimension_numbers = #tpu.dot_dimension_numbers<[1], [0], [0], [1], [0, 0, 1, 1], [], []>} : vector<16x16xbf16>, vector<16x8xbf16>, vector<16x8xf32> -> vector<16x8xf32>
    %c0_93 = arith.constant 0 : index
    %c0_94 = arith.constant 0 : index
    %265 = vector.load %arg22[%c0_93, %c0_94] : memref<16x32xf32, #tpu.memory_space<vmem>>, vector<16x8xf32>
    tpu.vector_store %arg22[%c0_93, %c0_94], %264 {strides = array<i32>} : memref<16x32xf32, #tpu.memory_space<vmem>>, vector<16x8xf32>,
    %266 = vector.extract_strided_slice %241 {offsets = [0, 1], sizes = [16, 1], strides = [1, 1]} : vector<16x8xf32> to vector<16x1xf32>
    %267 = vector.extract_strided_slice %242 {offsets = [5, 0], sizes = [1, 16], strides = [1, 1]} : vector<8x16xf32> to vector<1x16xf32>
    %268 = vector.broadcast %266 : vector<16x1xf32> to vector<16x16xf32>
    %269 = vector.broadcast %267 : vector<1x16xf32> to vector<16x16xf32>
    %270 = arith.addf %268, %269 : vector<16x16xf32>
    %cst_95 = arith.constant 2.000000e-01 : f32
    %271 = vector.broadcast %cst_95 : f32 to vector<16x16xf32>
    %272 = arith.mulf %271, %270 : vector<16x16xf32>
    %273 = arith.maximumf %270, %272 : vector<16x16xf32>
    %274 = arith.addf %273, %5 : vector<16x16xf32>
    %cst_96 = arith.constant dense<0xFF800000> : vector<16xf32>
    %275 = vector.multi_reduction <maximumf>, %274, %cst_96 [1] : vector<16x16xf32> to vector<16xf32>
    %276 = vector.shape_cast %275 : vector<16xf32> to vector<16x1xf32>
    %277 = vector.broadcast %276 : vector<16x1xf32> to vector<16x16xf32>
    %278 = arith.subf %274, %277 : vector<16x16xf32>
    %279 = math.exp %278 : vector<16x16xf32>
    %cst_97 = arith.constant dense<0.000000e+00> : vector<16xf32>
    %280 = vector.multi_reduction <add>, %279, %cst_97 [1] : vector<16x16xf32> to vector<16xf32>
    %281 = vector.shape_cast %280 : vector<16xf32> to vector<16x1xf32>
    %282 = tpu.reciprocal %281 {approx = true} : vector<16x1xf32> -> vector<16x1xf32>
    %283 = vector.broadcast %282 : vector<16x1xf32> to vector<16x16xf32>
    %284 = arith.mulf %279, %283 : vector<16x16xf32>
    %285 = arith.truncf %284 : vector<16x16xf32> to vector<16x16xbf16>
    %286 = vector.extract_strided_slice %239 {offsets = [0, 8], sizes = [16, 8], strides = [1, 1]} : vector<16x32xbf16> to vector<16x8xbf16>
    %cst_98 = arith.constant dense<0.000000e+00> : vector<16x8xf32>
    %287 = tpu.matmul %285, %286, %cst_98 {dimension_numbers = #tpu.dot_dimension_numbers<[1], [0], [0], [1], [0, 0, 1, 1], [], []>} : vector<16x16xbf16>, vector<16x8xbf16>, vector<16x8xf32> -> vector<16x8xf32>
    %c0_99 = arith.constant 0 : index
    %c8_100 = arith.constant 8 : index
    %288 = vector.load %arg22[%c0_99, %c8_100] : memref<16x32xf32, #tpu.memory_space<vmem>>, vector<16x8xf32>
    tpu.vector_store %arg22[%c0_99, %c8_100], %287 {strides = array<i32>} : memref<16x32xf32, #tpu.memory_space<vmem>>, vector<16x8xf32>,
    %289 = vector.extract_strided_slice %241 {offsets = [0, 2], sizes = [16, 1], strides = [1, 1]} : vector<16x8xf32> to vector<16x1xf32>
    %290 = vector.extract_strided_slice %242 {offsets = [6, 0], sizes = [1, 16], strides = [1, 1]} : vector<8x16xf32> to vector<1x16xf32>
    %291 = vector.broadcast %289 : vector<16x1xf32> to vector<16x16xf32>
    %292 = vector.broadcast %290 : vector<1x16xf32> to vector<16x16xf32>
    %293 = arith.addf %291, %292 : vector<16x16xf32>
    %cst_101 = arith.constant 2.000000e-01 : f32
    %294 = vector.broadcast %cst_101 : f32 to vector<16x16xf32>
    %295 = arith.mulf %294, %293 : vector<16x16xf32>
    %296 = arith.maximumf %293, %295 : vector<16x16xf32>
    %297 = arith.addf %296, %5 : vector<16x16xf32>
    %cst_102 = arith.constant dense<0xFF800000> : vector<16xf32>
    %298 = vector.multi_reduction <maximumf>, %297, %cst_102 [1] : vector<16x16xf32> to vector<16xf32>
    %299 = vector.shape_cast %298 : vector<16xf32> to vector<16x1xf32>
    %300 = vector.broadcast %299 : vector<16x1xf32> to vector<16x16xf32>
    %301 = arith.subf %297, %300 : vector<16x16xf32>
    %302 = math.exp %301 : vector<16x16xf32>
    %cst_103 = arith.constant dense<0.000000e+00> : vector<16xf32>
    %303 = vector.multi_reduction <add>, %302, %cst_103 [1] : vector<16x16xf32> to vector<16xf32>
    %304 = vector.shape_cast %303 : vector<16xf32> to vector<16x1xf32>
    %305 = tpu.reciprocal %304 {approx = true} : vector<16x1xf32> -> vector<16x1xf32>
    %306 = vector.broadcast %305 : vector<16x1xf32> to vector<16x16xf32>
    %307 = arith.mulf %302, %306 : vector<16x16xf32>
    %308 = arith.truncf %307 : vector<16x16xf32> to vector<16x16xbf16>
    %309 = vector.extract_strided_slice %239 {offsets = [0, 16], sizes = [16, 8], strides = [1, 1]} : vector<16x32xbf16> to vector<16x8xbf16>
    %cst_104 = arith.constant dense<0.000000e+00> : vector<16x8xf32>
    %310 = tpu.matmul %308, %309, %cst_104 {dimension_numbers = #tpu.dot_dimension_numbers<[1], [0], [0], [1], [0, 0, 1, 1], [], []>} : vector<16x16xbf16>, vector<16x8xbf16>, vector<16x8xf32> -> vector<16x8xf32>
    %c0_105 = arith.constant 0 : index
    %c16_106 = arith.constant 16 : index
    %311 = vector.load %arg22[%c0_105, %c16_106] : memref<16x32xf32, #tpu.memory_space<vmem>>, vector<16x8xf32>
    tpu.vector_store %arg22[%c0_105, %c16_106], %310 {strides = array<i32>} : memref<16x32xf32, #tpu.memory_space<vmem>>, vector<16x8xf32>,
    %312 = vector.extract_strided_slice %241 {offsets = [0, 3], sizes = [16, 1], strides = [1, 1]} : vector<16x8xf32> to vector<16x1xf32>
    %313 = vector.extract_strided_slice %242 {offsets = [7, 0], sizes = [1, 16], strides = [1, 1]} : vector<8x16xf32> to vector<1x16xf32>
    %314 = vector.broadcast %312 : vector<16x1xf32> to vector<16x16xf32>
    %315 = vector.broadcast %313 : vector<1x16xf32> to vector<16x16xf32>
    %316 = arith.addf %314, %315 : vector<16x16xf32>
    %cst_107 = arith.constant 2.000000e-01 : f32
    %317 = vector.broadcast %cst_107 : f32 to vector<16x16xf32>
    %318 = arith.mulf %317, %316 : vector<16x16xf32>
    %319 = arith.maximumf %316, %318 : vector<16x16xf32>
    %320 = arith.addf %319, %5 : vector<16x16xf32>
    %cst_108 = arith.constant dense<0xFF800000> : vector<16xf32>
    %321 = vector.multi_reduction <maximumf>, %320, %cst_108 [1] : vector<16x16xf32> to vector<16xf32>
    %322 = vector.shape_cast %321 : vector<16xf32> to vector<16x1xf32>
    %323 = vector.broadcast %322 : vector<16x1xf32> to vector<16x16xf32>
    %324 = arith.subf %320, %323 : vector<16x16xf32>
    %325 = math.exp %324 : vector<16x16xf32>
    %cst_109 = arith.constant dense<0.000000e+00> : vector<16xf32>
    %326 = vector.multi_reduction <add>, %325, %cst_109 [1] : vector<16x16xf32> to vector<16xf32>
    %327 = vector.shape_cast %326 : vector<16xf32> to vector<16x1xf32>
    %328 = tpu.reciprocal %327 {approx = true} : vector<16x1xf32> -> vector<16x1xf32>
    %329 = vector.broadcast %328 : vector<16x1xf32> to vector<16x16xf32>
    %330 = arith.mulf %325, %329 : vector<16x16xf32>
    %331 = arith.truncf %330 : vector<16x16xf32> to vector<16x16xbf16>
    %332 = vector.extract_strided_slice %239 {offsets = [0, 24], sizes = [16, 8], strides = [1, 1]} : vector<16x32xbf16> to vector<16x8xbf16>
    %cst_110 = arith.constant dense<0.000000e+00> : vector<16x8xf32>
    %333 = tpu.matmul %331, %332, %cst_110 {dimension_numbers = #tpu.dot_dimension_numbers<[1], [0], [0], [1], [0, 0, 1, 1], [], []>} : vector<16x16xbf16>, vector<16x8xbf16>, vector<16x8xf32> -> vector<16x8xf32>
    %c0_111 = arith.constant 0 : index
    %c24_112 = arith.constant 24 : index
    %334 = vector.load %arg22[%c0_111, %c24_112] : memref<16x32xf32, #tpu.memory_space<vmem>>, vector<16x8xf32>
    tpu.vector_store %arg22[%c0_111, %c24_112], %333 {strides = array<i32>} : memref<16x32xf32, #tpu.memory_space<vmem>>, vector<16x8xf32>,
    %c0_113 = arith.constant 0 : index
    %c0_114 = arith.constant 0 : index
    %335 = vector.load %arg22[%c0_113, %c0_114] : memref<16x32xf32, #tpu.memory_space<vmem>>, vector<16x32xf32>
    %c0_115 = arith.constant 0 : index
    %c0_116 = arith.constant 0 : index
    %336 = vector.load %arg16[%c0_115, %c0_116] : memref<1x32xf32, #tpu.memory_space<vmem>>, vector<1x32xf32>
    %337 = vector.broadcast %336 : vector<1x32xf32> to vector<16x32xf32>
    %338 = arith.addf %335, %337 : vector<16x32xf32>
    %cst_117 = arith.constant 0.000000e+00 : f32
    %339 = vector.broadcast %cst_117 : f32 to vector<16x32xf32>
    %340 = arith.maximumf %338, %339 : vector<16x32xf32>
    %c0_118 = arith.constant 0 : index
    %c0_119 = arith.constant 0 : index
    %341 = vector.load %arg17[%c0_118, %c0_119] : memref<1x32xf32, #tpu.memory_space<vmem>>, vector<1x32xf32>
    %342 = vector.broadcast %341 : vector<1x32xf32> to vector<16x32xf32>
    %343 = arith.mulf %340, %342 : vector<16x32xf32>
    %c0_120 = arith.constant 0 : index
    %c0_121 = arith.constant 0 : index
    %344 = vector.load %arg18[%c0_120, %c0_121] : memref<1x32xf32, #tpu.memory_space<vmem>>, vector<1x32xf32>
    %345 = vector.broadcast %344 : vector<1x32xf32> to vector<16x32xf32>
    %346 = arith.addf %343, %345 : vector<16x32xf32>
    %347 = arith.addf %346, %235 : vector<16x32xf32>
    %348 = arith.truncf %347 : vector<16x32xf32> to vector<16x32xbf16>
    %c0_122 = arith.constant 0 : index
    %c0_123 = arith.constant 0 : index
    %349 = vector.load %arg19[%c0_122, %c0_123] : memref<32x128xbf16, #tpu.memory_space<vmem>>, vector<32x128xbf16>
    %cst_124 = arith.constant dense<0.000000e+00> : vector<16x128xf32>
    %350 = tpu.matmul %348, %349, %cst_124 {dimension_numbers = #tpu.dot_dimension_numbers<[1], [0], [0], [1], [0, 0, 1, 1], [], []>} : vector<16x32xbf16>, vector<32x128xbf16>, vector<16x128xf32> -> vector<16x128xf32>
    %c0_125 = arith.constant 0 : index
    %c0_126 = arith.constant 0 : index
    %351 = vector.load %arg20[%c0_125, %c0_126] : memref<1x128xf32, #tpu.memory_space<vmem>>, vector<1x128xf32>
    %352 = vector.broadcast %351 : vector<1x128xf32> to vector<16x128xf32>
    %353 = arith.addf %350, %352 : vector<16x128xf32>
    %c0_127 = arith.constant 0 : index
    %c0_128 = arith.constant 0 : index
    %354 = vector.load %arg21[%c0_127, %c0_128] : memref<16x128xf32, #tpu.memory_space<vmem>>, vector<16x128xf32>
    tpu.vector_store %arg21[%c0_127, %c0_128], %353 {strides = array<i32>} : memref<16x128xf32, #tpu.memory_space<vmem>>, vector<16x128xf32>,
    return
  }
}

</mosaic_0001>

<bundles_post_ra>
// kernel: forward.1
= control target key start
LH: loop header
LB: loop body
LE: loop exit
PB: predicated region body
PF: predicated region fallthrough
CT: control target
= control target key end

     0   :  { %vm110_vm0 = vcmask 261120   ;;  %v1580_v13 = vmov 2   ;;  %v1581_v14 = vmov 1   ;;  %v1582_v15 = vmov 0   ;;  %s1588_s22 = smov 16   ;;  %s1589_s23 = smov 24   ;;  %s2015_s4 = inlined_call_operand.vmem [shape: bf16[32,32], index: 4, kind: input, shape index: {}]   ;;  %s2016_s0 = inlined_call_operand.vmem [shape: f32[16,32], index: 0, kind: input, shape index: {}]   ;;  %s2017_s2 = inlined_call_operand.vmem [shape: f32[1,32], index: 2, kind: input, shape index: {}]   ;;  %s2018_s3 = inlined_call_operand.vmem [shape: f32[1,32], index: 3, kind: input, shape index: {}]   ;;  %s2019_s5 = inlined_call_operand.vmem [shape: bf16[32,8], index: 5, kind: input, shape index: {}]   ;;  %s2020_s1 = inlined_call_operand.vmem [shape: s8[16,16], index: 1, kind: input, shape index: {}]   ;;  %s2021_s6 = inlined_call_operand.vmem [shape: f32[1,32], index: 6, kind: input, shape index: {}]   ;;  %s2022_s7 = inlined_call_operand.vmem [shape: f32[1,32], index: 7, kind: input, shape index: {}]   ;;  %s2023_s8 = inlined_call_operand.vmem [shape: f32[1,32], index: 8, kind: input, shape index: {}]   ;;  %s2024_s9 = inlined_call_operand.vmem [shape: bf16[32,32], index: 9, kind: input, shape index: {}]   ;;  %s2025_s10 = inlined_call_operand.vmem [shape: bf16[32,8], index: 10, kind: input, shape index: {}]   ;;  %s2026_s11 = inlined_call_operand.vmem [shape: f32[1,32], index: 11, kind: input, shape index: {}]   ;;  %s2027_s12 = inlined_call_operand.vmem [shape: f32[1,32], index: 12, kind: input, shape index: {}]   ;;  %s2028_s13 = inlined_call_operand.vmem [shape: f32[1,32], index: 13, kind: input, shape index: {}]   ;;  %s2029_s14 = inlined_call_operand.vmem [shape: bf16[32,32], index: 14, kind: input, shape index: {}]   ;;  %s2030_s15 = inlined_call_operand.vmem [shape: bf16[32,8], index: 15, kind: input, shape index: {}]   ;;  %s2031_s16 = inlined_call_operand.vmem [shape: f32[1,32], index: 16, kind: input, shape index: {}]   ;;  %s2032_s17 = inlined_call_operand.vmem [shape: f32[1,32], index: 17, kind: input, shape index: {}]   ;;  %s2033_s18 = inlined_call_operand.vmem [shape: f32[1,32], index: 18, kind: input, shape index: {}]   ;;  %s2034_s20 = inlined_call_operand.vmem [shape: f32[1,128], index: 20, kind: input, shape index: {}]   ;;  %s2035_s19 = inlined_call_operand.vmem [shape: bf16[32,128], index: 19, kind: input, shape index: {}]   ;;  %s2036_s21 = inlined_call_operand.vmem [shape: f32[16,128], index: 21, kind: output, shape index: {}]  }
   0x1   :  { %2040 = sst [smem:[#allocation3_spill]] %s2015_s4  ;;  %1455 = vset.pattern.permute.xlu2 %v1580_v13  ;;  %1454 = vset.pattern.permute.xlu1 %v1581_v14  ;;  %v1583_v25 = vmov 3   ;;  %vm219_vm1 = vcmask 130048   ;;  %s1584_s4 = smov 120   ;;  %vm261_vm2 = vcmask 64512   ;;  %vm332_vm3 = vcmask 130112  }
   0x2   :  { %2041 = sst [smem:[#allocation4_spill]] %s2016_s0  ;;  %1453 = vset.pattern.permute.xlu0 %v1582_v15  ;;  %vm403_vm4 = vcmask 195712   ;;  %vm474_vm5 = vcmask 261312  }
   0x3   :  { %2042 = sst [smem:[#allocation5_spill]] %s2017_s2 }
   0x4   :  { %2043 = sst [smem:[#allocation6_spill]] %s2018_s3 }
   0x5   :  { %2044 = sst [smem:[#allocation7_spill]] %s2019_s5  ;;  %s1585_s5 = smov 112  }
   0x6   :  { %2045 = sst [smem:[#allocation8_spill]] %s2020_s1  ;;  %s1587_s1 = smov 8  }
   0x7   :  { %2046 = sst [smem:[#allocation9_spill]] %s2031_s16 }
   0x8   :  { %s2047_s26 = sld [smem:[#allocation3_spill]] }
   0x9   :  { %s2048_s16 = sld [smem:[#allocation4_spill]] }
   0xa   :  { %s2049_s30 = sld [smem:[#allocation5_spill]] }
   0xb   :  { %s2050_s24 = sld [smem:[#allocation6_spill]] }
   0xc   :  { %s2051_s25 = sld [smem:[#allocation7_spill]] }
   0xd   :  { %s2052_s29 = sld [smem:[#allocation8_spill]] }
   0xe   :  { %v1425_v0 = vld [vmem:[%s2047_s26 + $0x8] sm:$0xff]  ;;  %v1424_v4 = vld [vmem:[%s2047_s26] sm:$0xff] }
   0xf   :  { %v79_v1 = vld [vmem:[%s2048_s16] sm:$0xff]  ;;  %v80_v2 = vld [vmem:[%s2048_s16 + $0x8] sm:$0xff]  ;;  %120 = vmatpush.bf16.msra.mxu0 %v1425_v0 }
  0x10   :  { %v1472_v3 = vld [vmem:[%s2049_s30] ss:$0 sm:$0xff]  ;;  %s1586_s30 = smov 104  }
  0x11   :  { %v1473_v5 = vld [vmem:[%s2050_s24] ss:$0 sm:$0xff]  ;;  %v85_v6 = vmul.f32 %v1472_v3, %v79_v1  ;;  %v86_v7 = vmul.f32 %v1472_v3, %v80_v2 }
  0x12   :  { %v1427_v11 = vld [vmem:[%s2051_s25 + $0x8] sm:$0xff]  ;;  %v1426_v12 = vld [vmem:[%s2051_s25] sm:$0xff] }
  0x13   :  { %v91_v8 = vadd.f32 %v1473_v5, %v85_v6  ;;  %v92_v9 = vadd.f32 %v1473_v5, %v86_v7  ;;  %121 = vmatpush.bf16.msra.mxu0 %v1424_v4  ;;  %160 = vmatpush.bf16.msra.mxu1 %v1427_v11  ;;  %v1439_v27 = vld [vmem:[%s2052_s29] sm:$0xf]  }
  0x14   :  { %v1440_v31 = vunpack.c.0.s8 %v1439_v27  ;;  %v1441_v33 = vunpack.c.1.s8 %v1439_v27 }
  0x15   :  { %v93_v10 = vpack.c.bf16 %v92_v9, %v91_v8 }
  0x16   :  { %v73_v32 = vcvt.s32.f32 %v1440_v31  ;;  %v74_v42 = vcvt.s32.f32 %v1441_v33 }
  0x17   :  { %1357 = vmatmul.msk.bf16.vlgmr.msra.gmra.mxu0 %vm110_vm0, %v93_v10  ;;  %161 = vmatpush.bf16.msra.mxu1 %v1426_v12 }
  0x18   :  { %v1347_v35 = vadd.f32 -1.0, %v73_v32  ;;  %v1348_v52 = vadd.f32 -1.0, %v74_v42 }
  0x1a   :  { %v1741_v47 = vmul.f32 1e+30, %v1347_v35  ;;  %v1746_v61 = vmul.f32 1e+30, %v1348_v52 }
  0x94   :  { %v123_v16 = vpop.f32.mrf.mxu0 }
  0x95   :  { %v128_v17 = vpack.c.bf16 %v123_v16, %v123_v16 }
  0x97   :  { %v136_v20 = vunpack.c.l.b16 %v128_v17 }
  0x9c   :  { %v125_v18 = vpop.f32.mrf.mxu0 }
  0x9d   :  { %v129_v19 = vpack.c.bf16 %v125_v18, %v125_v18 }
  0x9f   :  { %v137_v21 = vunpack.c.l.b16 %v129_v19 }
  0xa1   :  { %v1728_v22 = vpack.c.b16 %v137_v21, %v136_v20 }
  0xa3   :  { %1366 = vmatmul.msk.bf16.vlgmr.msra.gmra.mxu1 %vm110_vm0, %v1728_v22  ;;  %254 = vmatpush.bf16.msra.mxu2 %v1728_v22 }
 0x120   :  { %v163_v23 = vpop.f32.mrf.mxu1 }
 0x121   :  { %336 = vperm.xlu2 %1455, %v163_v23   ;;  %265 = vperm.xlu1 %1454, %v163_v23  }
 0x122   :  { %202 = vperm.xlu0 %1453, %v163_v23  }
 0x128   :  { %v165_v24 = vpop.f32.mrf.mxu1 }
 0x129   :  { %340 = vperm.xlu2 %1455, %v165_v24   ;;  %269 = vperm.xlu1 %1454, %v165_v24  }
 0x12a   :  { %1456 = vset.pattern.permute.xlu0 %v1583_v25 }
 0x12b   :  { %407 = vperm.xlu0 %1456, %v163_v23  }
 0x131   :  { %1458 = vset.pattern.permute.xlu1 %v1583_v25 }
 0x132   :  { %411 = vperm.xlu1 %1458, %v165_v24  }
 0x133   :  { %1457 = vset.pattern.permute.xlu0 %v1582_v15 }
 0x134   :  { %207 = vperm.xlu0 %1457, %v165_v24  }
 0x13a   :  { %1462 = vset.pattern.permute.xlu1 %v1581_v14 }
 0x13c   :  { %1459 = vset.pattern.permute.xlu0 %v1581_v14 }
 0x14f   :  { %168 = vxpose.xlu2.b32.start [1/2] (short) (narrow) %v163_v23, 8 }
 0x157   :  { %169 = vxpose.xlu2.b32.end [2/2] (short) (narrow) %v165_v24, 8 }
 0x17b   :  { %v337_v26 = vpop.permute.xlu2 %336 }
 0x183   :  { %v341_v29 = vpop.permute.xlu2 %340 }
 0x193   :  { %v266_v30 = vpop.permute.xlu1 %265 }
 0x194   :  { %v203_v28 = vpop.permute.xlu0 %202 }
 0x19b   :  { %v270_v41 = vpop.permute.xlu1 %269 }
 0x19d   :  { %v408_v36 = vpop.permute.xlu0 %407 }
 0x1a4   :  { %v412_v10 = vpop.permute.xlu1 %411 }
 0x1a6   :  { %v208_v63 = vpop.permute.xlu0 %207 }
 0x1e8   :  { %v184_v34 = vpop.trf.xlu2 }
 0x1e9   :  { %v210_v37 = vperm.slane %v184_v34, 4  ;;  %v272_v38 = vperm.slane %v184_v34, 5  ;;  %v343_v39 = vperm.slane %v184_v34, 6  ;;  %v414_v40 = vperm.slane %v184_v34, 7 }
 0x1eb   :  { %v273_v43 = vadd.f32 %v272_v38, %v266_v30  ;;  %v211_v44 = vadd.f32 %v210_v37, %v203_v28  ;;  %v344_v45 = vadd.f32 %v343_v39, %v337_v26  ;;  %v274_v46 = vadd.f32 %v272_v38, %v270_v41 }
 0x1ec   :  { %v415_v48 = vadd.f32 %v414_v40, %v408_v36  ;;  %v345_v62 = vadd.f32 %v343_v39, %v341_v29  ;;  %v212_v5 = vadd.f32 %v210_v37, %v208_v63  ;;  %v416_v16 = vadd.f32 %v414_v40, %v412_v10 }
 0x1ed   :  { %v275_v49 = vmul.f32 0.2, %v273_v43  ;;  %v213_v50 = vmul.f32 0.2, %v211_v44  ;;  %v346_v51 = vmul.f32 0.2, %v344_v45 }
 0x1ee   :  { %v276_v56 = vmul.f32 0.2, %v274_v46  ;;  %v417_v57 = vmul.f32 0.2, %v415_v48  ;;  %v347_v7 = vmul.f32 0.2, %v345_v62 }
 0x1ef   :  { %v277_v53 = vmax.f32 %v273_v43, %v275_v49  ;;  %v215_v54 = vmax.f32 %v211_v44, %v213_v50  ;;  %v348_v55 = vmax.f32 %v344_v45, %v346_v51  ;;  %v214_v9 = vmul.f32 0.2, %v212_v5 }
 0x1f0   :  { %v278_v3 = vmax.f32 %v274_v46, %v276_v56  ;;  %v419_v4 = vmax.f32 %v415_v48, %v417_v57  ;;  %v349_v12 = vmax.f32 %v345_v62, %v347_v7  ;;  %v418_v20 = vmul.f32 0.2, %v416_v16 }
 0x1f1   :  { %v279_v58 = vadd.f32 %v277_v53, %v1741_v47  ;;  %v217_v59 = vadd.f32 %v215_v54, %v1741_v47  ;;  %v350_v60 = vadd.f32 %v348_v55, %v1741_v47  ;;  %v216_v18 = vmax.f32 %v212_v5, %v214_v9 }
 0x1f2   :  { %v280_v6 = vadd.f32 %v278_v3, %v1746_v61  ;;  %v421_v8 = vadd.f32 %v419_v4, %v1741_v47  ;;  %v351_v19 = vadd.f32 %v349_v12, %v1746_v61  ;;  %v420_v24 = vmax.f32 %v416_v16, %v418_v20 }
 0x1f3   :  { %v281_v0 = vsel %vm219_vm1, %v279_v58, -inf  ;;  %v220_v1 = vsel %vm219_vm1, %v217_v59, -inf  ;;  %v352_v2 = vsel %vm219_vm1, %v350_v60, -inf  ;;  %v218_v21 = vadd.f32 %v216_v18, %v1746_v61 }
 0x1f4   :  { %282 = vmax.xlane.f32.xlu2 %v281_v0  ;;  %221 = vmax.xlane.f32.xlu1 %v220_v1  ;;  %v284_v11 = vsel %vm219_vm1, %v280_v6, -inf  ;;  %v423_v17 = vsel %vm219_vm1, %v421_v8, -inf  ;;  %v355_v23 = vsel %vm219_vm1, %v351_v19, -inf  ;;  %v422_v27 = vadd.f32 %v420_v24, %v1746_v61 }
 0x1f5   :  { %353 = vmax.xlane.f32.xlu0 %v352_v2  ;;  %v223_v26 = vsel %vm219_vm1, %v218_v21, -inf }
 0x1f6   :  { %v426_v28 = vsel %vm219_vm1, %v422_v27, -inf }
 0x1fc   :  { %285 = vmax.xlane.f32.xlu1 %v284_v11 }
 0x1fd   :  { %424 = vmax.xlane.f32.xlu0 %v423_v17 }
 0x204   :  { %356 = vmax.xlane.f32.xlu1 %v355_v23 }
 0x205   :  { %224 = vmax.xlane.f32.xlu0 %v223_v26 }
 0x20c   :  { %427 = vmax.xlane.f32.xlu1 %v426_v28 }
 0x267   :  { %v222_v29 = vpop.xlane.xlu1 %221  ;;  %v283_v30 = vpop.xlane.xlu2 %282 }
 0x268   :  { %v226_v31 = vsub.f32 %v217_v59, %v222_v29  ;;  %v354_v32 = vpop.xlane.xlu0 %353  ;;  %v287_v35 = vsub.f32 %v279_v58, %v283_v30 }
 0x269   :  { %v358_v33 = vsub.f32 %v350_v60, %v354_v32 }
 0x26a   :  { %v228_v34 = vmul.f32 1.442695, %v226_v31  ;;  %v289_v37 = vmul.f32 1.442695, %v287_v35 }
 0x26b   :  { %v360_v36 = vmul.f32 1.442695, %v358_v33 }
 0x26c   :  { %1484 = vpow2.f32 %v228_v34 }
 0x26d   :  { %1486 = vpow2.f32 %v360_v36 }
 0x26e   :  { %1488 = vpow2.f32 %v289_v37 }
 0x26f   :  { %v286_v45 = vpop.xlane.xlu1 %285 }
 0x270   :  { %v425_v38 = vpop.xlane.xlu0 %424  ;;  %v288_v52 = vsub.f32 %v280_v6, %v286_v45 }
 0x271   :  { %v429_v39 = vsub.f32 %v421_v8, %v425_v38 }
 0x272   :  { %v1485_v40 = vpop.eup %1484  ;;  %v291_v55 = vmul.f32 1.442695, %v288_v52 }
 0x273   :  { %v431_v41 = vmul.f32 1.442695, %v429_v39  ;;  %v1761_v42 = vpop.eup %1486  ;;  %v232_v43 = vsel %vm219_vm1, %v1485_v40, 0.0 }
 0x274   :  { %233 = vadd.xlane.f32.xlu0 %v232_v43  ;;  %v364_v44 = vsel %vm219_vm1, %v1761_v42, 0.0  ;;  %v1489_v48 = vpop.eup %1488 }
 0x275   :  { %1490 = vpow2.f32 %v431_v41  ;;  %365 = vadd.xlane.f32.xlu1 %v364_v44  ;;  %v293_v53 = vsel %vm219_vm1, %v1489_v48, 0.0 }
 0x277   :  { %v357_v56 = vpop.xlane.xlu1 %356 }
 0x278   :  { %v225_v46 = vpop.xlane.xlu0 %224  ;;  %v359_v58 = vsub.f32 %v351_v19, %v357_v56  ;;  %v1428_v56 = vld [vmem:[%s2024_s9] sm:$0xff] }
 0x279   :  { %v227_v49 = vsub.f32 %v218_v21, %v225_v46 }
 0x27a   :  { %v362_v60 = vmul.f32 1.442695, %v359_v58  ;;  %v1474_v58 = vld [vmem:[%s2021_s6] ss:$0 sm:$0xff] }
 0x27b   :  { %v1766_v50 = vpop.eup %1490  ;;  %v230_v51 = vmul.f32 1.442695, %v227_v49 }
 0x27c   :  { %v435_v54 = vsel %vm219_vm1, %v1766_v50, 0.0  ;;  %294 = vadd.xlane.f32.xlu0 %v293_v53 }
 0x27d   :  { %1492 = vpow2.f32 %v230_v51  ;;  %436 = vadd.xlane.f32.xlu1 %v435_v54  ;;  %v1429_v54 = vld [vmem:[%s2024_s9 + $0x8] sm:$0xff] }
 0x27e   :  { %1494 = vpow2.f32 %v291_v55  ;;  %525 = vmatpush.bf16.msrb.mxu0 %v1429_v54 }
 0x27f   :  { %1496 = vpow2.f32 %v362_v60  ;;  %v428_v2 = vpop.xlane.xlu1 %427 }
 0x280   :  { %v430_v3 = vsub.f32 %v422_v27, %v428_v2 }
 0x282   :  { %v433_v4 = vmul.f32 1.442695, %v430_v3  ;;  %526 = vmatpush.bf16.msrb.mxu0 %v1428_v56 }
 0x283   :  { %v1493_v57 = vpop.eup %1492 }
 0x284   :  { %v235_v59 = vsel %vm219_vm1, %v1493_v57, 0.0  ;;  %v1495_v62 = vpop.eup %1494  ;;  %1498 = vpow2.f32 %v433_v4 }
 0x285   :  { %236 = vadd.xlane.f32.xlu1 %v235_v59  ;;  %v296_v63 = vsel %vm219_vm1, %v1495_v62, 0.0  ;;  %v1497_v0 = vpop.eup %1496 }
 0x286   :  { %v367_v1 = vsel %vm219_vm1, %v1497_v0, 0.0 }
 0x28a   :  { %v1499_v5 = vpop.eup %1498 }
 0x28b   :  { %v438_v6 = vsel %vm219_vm1, %v1499_v5, 0.0 }
 0x28d   :  { %297 = vadd.xlane.f32.xlu1 %v296_v63 }
 0x290   :  { %304 = vrot.lane.b32.xlu0 %v1728_v22, %s1584_s4 }
 0x295   :  { %368 = vadd.xlane.f32.xlu1 %v367_v1 }
 0x2ae   :  { %375 = vrot.lane.b32.xlu1 %v1728_v22, %s1585_s5 }
 0x2b6   :  { %446 = vrot.lane.b32.xlu1 %v1728_v22, %s1586_s30 }
 0x2ba   :  { %439 = vadd.xlane.f32.xlu0 %v438_v6 }
 0x2e7   :  { %v234_v8 = vpop.xlane.xlu0 %233 }
 0x2e8   :  { %v366_v7 = vpop.xlane.xlu1 %365  ;;  %1500 = vrcp.f32 %v234_v8 }
 0x2ee   :  { %v1501_v12 = vpop.eup %1500 }
 0x2ef   :  { %v295_v11 = vpop.xlane.xlu0 %294  ;;  %v240_v18 = vmul.f32 %v1501_v12, %v1485_v40 }
 0x2f0   :  { %v437_v9 = vpop.xlane.xlu1 %436 }
 0x2f8   :  { %v237_v10 = vpop.xlane.xlu1 %236 }
 0x2f9   :  { %1502 = vrcp.f32 %v237_v10  ;;  %v1431_v10 = vld [vmem:[%s2025_s10 + $0x8] sm:$0xff] }
 0x2fa   :  { %1504 = vrcp.f32 %v295_v11  ;;  %565 = vmatpush.bf16.msrb.mxu1 %v1431_v10  ;;  %v1430_v11 = vld [vmem:[%s2025_s10] sm:$0xff] }
 0x2fe   :  { %566 = vmatpush.bf16.msrb.mxu1 %v1430_v11 }
 0x2ff   :  { %v1503_v16 = vpop.eup %1502 }
 0x300   :  { %v298_v17 = vpop.xlane.xlu1 %297  ;;  %v241_v19 = vmul.f32 %v1503_v16, %v1493_v57  ;;  %v1505_v22 = vpop.eup %1504 }
 0x301   :  { %1506 = vrcp.f32 %v298_v17  ;;  %v301_v24 = vmul.f32 %v1505_v22, %v1489_v48 }
 0x302   :  { %v305_v20 = vpop.permute.xlu0 %304  ;;  %v242_v21 = vpack.c.bf16 %v241_v19, %v240_v18 }
 0x303   :  { %317 = vmatpush.bf16.msra.mxu3 %v305_v20 }
 0x304   :  { %1367 = vmatmul.msk.bf16.vlgmr.msra.gmra.mxu2 %vm219_vm1, %v242_v21 }
 0x307   :  { %v1507_v23 = vpop.eup %1506 }
 0x308   :  { %v302_v26 = vmul.f32 %v1507_v23, %v1495_v62  ;;  %v369_v28 = vpop.xlane.xlu1 %368 }
 0x309   :  { %1508 = vrcp.f32 %v369_v28 }
 0x30a   :  { %v303_v27 = vpack.c.bf16 %v302_v26, %v301_v24  ;;  %1510 = vrcp.f32 %v366_v7 }
 0x30b   :  { %1512 = vrcp.f32 %v437_v9 }
 0x30c   :  { %1368 = vmatmul.msk.bf16.vlgmr.msra.gmra.mxu3 %vm219_vm1, %v303_v27 }
 0x30f   :  { %v1509_v29 = vpop.eup %1508 }
 0x310   :  { %v1511_v30 = vpop.eup %1510  ;;  %v373_v31 = vmul.f32 %v1509_v29, %v1497_v0  ;;  %v1475_v0 = vld [vmem:[%s2022_s7] ss:$0 sm:$0xff] }
 0x311   :  { %v372_v32 = vmul.f32 %v1511_v30, %v1761_v42  ;;  %v1513_v37 = vpop.eup %1512 }
 0x312   :  { %v443_v39 = vmul.f32 %v1513_v37, %v1766_v50 }
 0x313   :  { %v374_v34 = vpack.c.bf16 %v373_v31, %v372_v32 }
 0x320   :  { %v376_v33 = vpop.permute.xlu1 %375 }
 0x321   :  { %388 = vmatpush.bf16.msrb.mxu2 %v376_v33 }
 0x324   :  { %1369 = vmatmul.msk.bf16.vlgmr.msrb.gmra.mxu2 %vm219_vm1, %v374_v34 }
 0x328   :  { %v447_v35 = vpop.permute.xlu1 %446 }
 0x329   :  { %459 = vmatpush.bf16.msrb.mxu3 %v447_v35 }
 0x32d   :  { %v440_v36 = vpop.xlane.xlu0 %439 }
 0x32e   :  { %1514 = vrcp.f32 %v440_v36 }
 0x334   :  { %v1515_v38 = vpop.eup %1514 }
 0x335   :  { %v444_v40 = vmul.f32 %v1515_v38, %v1499_v5  ;;  %v1476_v5 = vld [vmem:[%s2023_s8] ss:$0 sm:$0xff] }
 0x337   :  { %v445_v41 = vpack.c.bf16 %v444_v40, %v443_v39 }
 0x339   :  { %1370 = vmatmul.msk.bf16.vlgmr.msrb.gmra.mxu3 %vm219_vm1, %v445_v41 }
 0x387   :  { %v256_v42 = vpop.f32.mrf.mxu2 }
 0x388   :  { %262 = vst.msk [vmem:[#allocation2] sm:$0xff] %vm261_vm2, %v256_v42 }
 0x38f   :  { %v258_v43 = vpop.f32.mrf.mxu2  ;;  %v319_v44 = vpop.f32.mrf.mxu3 }
 0x390   :  { %263 = vst.msk [vmem:[#allocation2 + $0x8] sm:$0xff] %vm261_vm2, %v258_v43  ;;  %326 = vrot.lane.b32.xlu1 %v319_v44, %s1587_s1 }
 0x397   :  { %v321_v45 = vpop.f32.mrf.mxu3 }
 0x398   :  { %328 = vrot.lane.b32.xlu0 %v321_v45, %s1587_s1 }
 0x3a7   :  { %v390_v46 = vpop.f32.mrf.mxu2 }
 0x3a8   :  { %397 = vrot.lane.b32.xlu1 %v390_v46, %s1588_s22 }
 0x3af   :  { %v392_v48 = vpop.f32.mrf.mxu2 }
 0x3b0   :  { %399 = vrot.lane.b32.xlu2 %v392_v48, %s1588_s22 }
 0x3bc   :  { %v461_v49 = vpop.f32.mrf.mxu3 }
 0x3bd   :  { %468 = vrot.lane.b32.xlu1 %v461_v49, %s1589_s23 }
 0x3c4   :  { %v463_v50 = vpop.f32.mrf.mxu3 }
 0x3c5   :  { %470 = vrot.lane.b32.xlu1 %v463_v50, %s1589_s23 }
 0x402   :  { %v327_v51 = vpop.permute.xlu1 %326 }
 0x403   :  { %333 = vst.msk [vmem:[#allocation2] sm:$0xff] %vm332_vm3, %v327_v51 }
 0x40a   :  { %v400_v52 = vpop.permute.xlu2 %399  ;;  %v329_v53 = vpop.permute.xlu0 %328 }
 0x40b   :  { %334 = vst.msk [vmem:[#allocation2 + $0x8] sm:$0xff] %vm332_vm3, %v329_v53 }
 0x40c   :  { %405 = vst.msk [vmem:[#allocation2 + $0x8] sm:$0xff] %vm403_vm4, %v400_v52 }
 0x41a   :  { %v398_v55 = vpop.permute.xlu1 %397 }
 0x41b   :  { %404 = vst.msk [vmem:[#allocation2] sm:$0xff] %vm403_vm4, %v398_v55 }
 0x42f   :  { %v469_v57 = vpop.permute.xlu1 %468 }
 0x430   :  { %475 = vst.msk [vmem:[#allocation2] sm:$0xff] %vm474_vm5, %v469_v57 }
 0x437   :  { %v471_v59 = vpop.permute.xlu1 %470  ;;  %v477_v60 = vld [vmem:[#allocation2] sm:$0xff] }
 0x438   :  { %476 = vst.msk [vmem:[#allocation2 + $0x8] sm:$0xff] %vm474_vm5, %v471_v59  ;;  %v483_v62 = vadd.f32 %v1474_v58, %v477_v60 }
 0x43a   :  { %v485_v63 = vmax.f32 %v483_v62, 0.0 }
 0x43c   :  { %v491_v4 = vmul.f32 %v1475_v0, %v485_v63 }
 0x43e   :  { %v1816_v7 = vadd.f32 %v1476_v5, %v491_v4 }
 0x43f   :  { %v478_v1 = vld [vmem:[#allocation2 + $0x8] sm:$0xff] }
 0x440   :  { %v484_v2 = vadd.f32 %v1474_v58, %v478_v1 }
 0x442   :  { %v486_v3 = vmax.f32 %v484_v2, 0.0 }
 0x444   :  { %v492_v6 = vmul.f32 %v1475_v0, %v486_v3 }
 0x446   :  { %v1818_v8 = vadd.f32 %v1476_v5, %v492_v6 }
 0x448   :  { %v499_v9 = vpack.c.bf16 %v1818_v8, %v1816_v7 }
 0x44a   :  { %1379 = vmatmul.msk.bf16.vlgmr.msrb.gmra.mxu0 %vm110_vm0, %v499_v9 }
 0x4c7   :  { %v528_v12 = vpop.f32.mrf.mxu0 }
 0x4c8   :  { %v533_v16 = vpack.c.bf16 %v528_v12, %v528_v12 }
 0x4ca   :  { %v541_v19 = vunpack.c.l.b16 %v533_v16 }
 0x4cf   :  { %v530_v17 = vpop.f32.mrf.mxu0 }
 0x4d0   :  { %v534_v18 = vpack.c.bf16 %v530_v17, %v530_v17 }
 0x4d2   :  { %v542_v20 = vunpack.c.l.b16 %v534_v18 }
 0x4d4   :  { %v1829_v21 = vpack.c.b16 %v542_v20, %v541_v19 }
 0x4d6   :  { %1388 = vmatmul.msk.bf16.vlgmr.msrb.gmra.mxu1 %vm110_vm0, %v1829_v21  ;;  %658 = vmatpush.bf16.msra.mxu2 %v1829_v21 }
 0x553   :  { %v568_v22 = vpop.f32.mrf.mxu1 }
 0x554   :  { %738 = vperm.xlu2 %1455, %v568_v22   ;;  %668 = vperm.xlu0 %1459, %v568_v22  }
 0x55b   :  { %v570_v23 = vpop.f32.mrf.mxu1 }
 0x55c   :  { %1461 = vset.pattern.permute.xlu2 %v1582_v15  ;;  %1460 = vset.pattern.permute.xlu0 %v1583_v25 }
 0x55d   :  { %672 = vperm.xlu1 %1462, %v570_v23   ;;  %607 = vperm.xlu2 %1461, %v568_v22  }
 0x55e   :  { %808 = vperm.xlu0 %1460, %v568_v22  }
 0x565   :  { %1463 = vset.pattern.permute.xlu1 %v1580_v13  ;;  %1464 = vset.pattern.permute.xlu2 %v1583_v25 }
 0x566   :  { %1465 = vset.pattern.permute.xlu0 %v1582_v15  ;;  %742 = vperm.xlu1 %1463, %v570_v23  }
 0x567   :  { %612 = vperm.xlu0 %1465, %v570_v23   ;;  %812 = vperm.xlu2 %1464, %v570_v23  }
 0x56f   :  { %1466 = vset.pattern.permute.xlu0 %v1580_v13 }
 0x59b   :  { %573 = vxpose.xlu1.b32.start [1/2] (short) (narrow) %v568_v22, 8 }
 0x5a3   :  { %574 = vxpose.xlu1.b32.end [2/2] (short) (narrow) %v570_v23, 8 }
 0x5ae   :  { %v739_v24 = vpop.permute.xlu2 %738 }
 0x5b7   :  { %v608_v28 = vpop.permute.xlu2 %607 }
 0x5c1   :  { %v813_v35 = vpop.permute.xlu2 %812 }
 0x5c6   :  { %v669_v27 = vpop.permute.xlu0 %668 }
 0x5cf   :  { %v673_v26 = vpop.permute.xlu1 %672 }
 0x5d0   :  { %v809_v30 = vpop.permute.xlu0 %808 }
 0x5d8   :  { %v743_v29 = vpop.permute.xlu1 %742 }
 0x5d9   :  { %v613_v50 = vpop.permute.xlu0 %612 }
 0x63f   :  { %v589_v31 = vpop.trf.xlu1 }
 0x640   :  { %v675_v32 = vperm.slane %v589_v31, 5  ;;  %v745_v33 = vperm.slane %v589_v31, 6  ;;  %v815_v34 = vperm.slane %v589_v31, 7  ;;  %v615_v43 = vperm.slane %v589_v31, 4 }
 0x642   :  { %v747_v36 = vadd.f32 %v745_v33, %v743_v29  ;;  %v677_v37 = vadd.f32 %v675_v32, %v673_v26  ;;  %v676_v38 = vadd.f32 %v675_v32, %v669_v27  ;;  %v817_v39 = vadd.f32 %v815_v34, %v813_v35 }
 0x643   :  { %v746_v40 = vadd.f32 %v745_v33, %v739_v24  ;;  %v617_v54 = vadd.f32 %v615_v43, %v613_v50  ;;  %v816_v60 = vadd.f32 %v815_v34, %v809_v30  ;;  %v616_v6 = vadd.f32 %v615_v43, %v608_v28 }
 0x644   :  { %v749_v41 = vmul.f32 0.2, %v747_v36  ;;  %v679_v13 = vmul.f32 0.2, %v677_v37  ;;  %v678_v42 = vmul.f32 0.2, %v676_v38 }
 0x645   :  { %v819_v48 = vmul.f32 0.2, %v817_v39  ;;  %v748_v49 = vmul.f32 0.2, %v746_v40  ;;  %v619_v63 = vmul.f32 0.2, %v617_v54 }
 0x646   :  { %v751_v44 = vmax.f32 %v747_v36, %v749_v41  ;;  %v681_v45 = vmax.f32 %v677_v37, %v679_v13  ;;  %v680_v46 = vmax.f32 %v676_v38, %v678_v42  ;;  %v818_v1 = vmul.f32 0.2, %v816_v60 }
 0x647   :  { %v821_v58 = vmax.f32 %v817_v39, %v819_v48  ;;  %v750_v59 = vmax.f32 %v746_v40, %v748_v49  ;;  %v621_v3 = vmax.f32 %v617_v54, %v619_v63  ;;  %v618_v11 = vmul.f32 0.2, %v616_v6 }
 0x648   :  { %v753_v51 = vadd.f32 %v751_v44, %v1746_v61  ;;  %v683_v52 = vadd.f32 %v681_v45, %v1746_v61  ;;  %v682_v53 = vadd.f32 %v680_v46, %v1741_v47  ;;  %v820_v5 = vmax.f32 %v816_v60, %v818_v1 }
 0x649   :  { %v823_v62 = vadd.f32 %v821_v58, %v1746_v61  ;;  %v752_v0 = vadd.f32 %v750_v59, %v1741_v47  ;;  %v1851_v9 = vadd.f32 %v621_v3, %v1746_v61  ;;  %v620_v17 = vmax.f32 %v616_v6, %v618_v11 }
 0x64a   :  { %v757_v55 = vsel %vm219_vm1, %v753_v51, -inf  ;;  %v687_v56 = vsel %vm219_vm1, %v683_v52, -inf  ;;  %v684_v57 = vsel %vm219_vm1, %v682_v53, -inf  ;;  %v822_v10 = vadd.f32 %v820_v5, %v1741_v47 }
 0x64b   :  { %758 = vmax.xlane.f32.xlu1 %v757_v55  ;;  %688 = vmax.xlane.f32.xlu0 %v687_v56  ;;  %v827_v2 = vsel %vm219_vm1, %v823_v62, -inf  ;;  %v754_v4 = vsel %vm219_vm1, %v752_v0, -inf  ;;  %v627_v12 = vsel %vm219_vm1, %v1851_v9, -inf  ;;  %v622_v18 = vadd.f32 %v620_v17, %v1741_v47 }
 0x64c   :  { %685 = vmax.xlane.f32.xlu2 %v684_v57  ;;  %v824_v16 = vsel %vm219_vm1, %v822_v10, -inf }
 0x64d   :  { %v624_v19 = vsel %vm219_vm1, %v622_v18, -inf }
 0x653   :  { %828 = vmax.xlane.f32.xlu0 %v827_v2 }
 0x654   :  { %755 = vmax.xlane.f32.xlu2 %v754_v4 }
 0x65b   :  { %628 = vmax.xlane.f32.xlu0 %v627_v12 }
 0x65c   :  { %825 = vmax.xlane.f32.xlu2 %v824_v16 }
 0x664   :  { %625 = vmax.xlane.f32.xlu2 %v624_v19 }
 0x67c   :  { %707 = vrot.lane.b32.xlu2 %v1829_v21, %s1584_s4 }
 0x6be   :  { %v689_v20 = vpop.xlane.xlu0 %688  ;;  %v759_v22 = vpop.xlane.xlu1 %758 }
 0x6bf   :  { %v691_v23 = vsub.f32 %v683_v52, %v689_v20  ;;  %v686_v24 = vpop.xlane.xlu2 %685  ;;  %v761_v28 = vsub.f32 %v753_v51, %v759_v22 }
 0x6c0   :  { %v690_v26 = vsub.f32 %v682_v53, %v686_v24 }
 0x6c1   :  { %v694_v27 = vmul.f32 1.442695, %v691_v23  ;;  %v764_v30 = vmul.f32 1.442695, %v761_v28 }
 0x6c2   :  { %v692_v29 = vmul.f32 1.442695, %v690_v26 }
 0x6c3   :  { %1516 = vpow2.f32 %v694_v27 }
 0x6c4   :  { %1518 = vpow2.f32 %v692_v29 }
 0x6c5   :  { %1520 = vpow2.f32 %v764_v30 }
 0x6c6   :  { %v829_v31 = vpop.xlane.xlu0 %828 }
 0x6c7   :  { %v756_v32 = vpop.xlane.xlu2 %755  ;;  %v831_v35 = vsub.f32 %v823_v62, %v829_v31 }
 0x6c8   :  { %v760_v33 = vsub.f32 %v752_v0, %v756_v32 }
 0x6c9   :  { %v1517_v34 = vpop.eup %1516  ;;  %v834_v40 = vmul.f32 1.442695, %v831_v35 }
 0x6ca   :  { %v762_v36 = vmul.f32 1.442695, %v760_v33  ;;  %v1519_v37 = vpop.eup %1518  ;;  %v699_v38 = vsel %vm219_vm1, %v1517_v34, 0.0 }
 0x6cb   :  { %700 = vadd.xlane.f32.xlu0 %v699_v38  ;;  %v696_v39 = vsel %vm219_vm1, %v1519_v37, 0.0  ;;  %v1521_v13 = vpop.eup %1520 }
 0x6cc   :  { %1522 = vpow2.f32 %v762_v36  ;;  %697 = vadd.xlane.f32.xlu2 %v696_v39  ;;  %v769_v45 = vsel %vm219_vm1, %v1521_v13, 0.0 }
 0x6cd   :  { %1524 = vpow2.f32 %v834_v40 }
 0x6ce   :  { %v629_v55 = vpop.xlane.xlu0 %628 }
 0x6cf   :  { %v826_v41 = vpop.xlane.xlu2 %825  ;;  %v631_v56 = vsub.f32 %v1851_v9, %v629_v55 }
 0x6d0   :  { %v830_v42 = vsub.f32 %v822_v10, %v826_v41 }
 0x6d1   :  { %v634_v58 = vmul.f32 1.442695, %v631_v56  ;;  %v1478_v56 = vld [vmem:[%s2027_s12] ss:$0 sm:$0xff] }
 0x6d2   :  { %v1523_v43 = vpop.eup %1522  ;;  %v832_v44 = vmul.f32 1.442695, %v830_v42 }
 0x6d3   :  { %v766_v46 = vsel %vm219_vm1, %v1523_v43, 0.0  ;;  %770 = vadd.xlane.f32.xlu0 %v769_v45  ;;  %v1525_v49 = vpop.eup %1524  ;;  %v1433_v45 = vld [vmem:[%s2029_s14 + $0x8] sm:$0xff] }
 0x6d4   :  { %1526 = vpow2.f32 %v832_v44  ;;  %767 = vadd.xlane.f32.xlu2 %v766_v46  ;;  %v839_v51 = vsel %vm219_vm1, %v1525_v49, 0.0  ;;  %927 = vmatpush.bf16.msrb.mxu2 %v1433_v45  ;;  %v1432_v46 = vld [vmem:[%s2029_s14] sm:$0xff] }
 0x6d7   :  { %v626_v48 = vpop.xlane.xlu2 %625 }
 0x6d8   :  { %v630_v54 = vsub.f32 %v622_v18, %v626_v48  ;;  %928 = vmatpush.bf16.msrb.mxu2 %v1432_v46 }
 0x6da   :  { %v1527_v50 = vpop.eup %1526  ;;  %v632_v57 = vmul.f32 1.442695, %v630_v54 }
 0x6db   :  { %v836_v52 = vsel %vm219_vm1, %v1527_v50, 0.0  ;;  %840 = vadd.xlane.f32.xlu0 %v839_v51  ;;  %v1477_v51 = vld [vmem:[%s2026_s11] ss:$0 sm:$0xff] }
 0x6dc   :  { %837 = vadd.xlane.f32.xlu2 %v836_v52  ;;  %1528 = vpow2.f32 %v632_v57 }
 0x6dd   :  { %1530 = vpow2.f32 %v634_v58 }
 0x6df   :  { %v708_v53 = vpop.permute.xlu2 %707 }
 0x6e0   :  { %720 = vmatpush.bf16.msra.mxu3 %v708_v53 }
 0x6e2   :  { %v1529_v59 = vpop.eup %1528 }
 0x6e3   :  { %v636_v60 = vsel %vm219_vm1, %v1529_v59, 0.0  ;;  %v1531_v62 = vpop.eup %1530 }
 0x6e4   :  { %v639_v63 = vsel %vm219_vm1, %v1531_v62, 0.0 }
 0x6ef   :  { %777 = vrot.lane.b32.xlu0 %v1829_v21, %s1585_s5 }
 0x6f4   :  { %847 = vrot.lane.b32.xlu2 %v1829_v21, %s1586_s30 }
 0x719   :  { %637 = vadd.xlane.f32.xlu0 %v636_v60  ;;  %v1479_v60 = vld [vmem:[%s2028_s13] ss:$0 sm:$0xff] }
 0x71d   :  { %640 = vadd.xlane.f32.xlu2 %v639_v63 }
 0x73e   :  { %v701_v0 = vpop.xlane.xlu0 %700 }
 0x73f   :  { %1532 = vrcp.f32 %v701_v0  ;;  %v698_v1 = vpop.xlane.xlu2 %697 }
 0x740   :  { %1534 = vrcp.f32 %v698_v1 }
 0x745   :  { %v1533_v21 = vpop.eup %1532 }
 0x746   :  { %v1535_v2 = vpop.eup %1534  ;;  %v705_v3 = vmul.f32 %v1533_v21, %v1517_v34  ;;  %v771_v4 = vpop.xlane.xlu0 %770 }
 0x747   :  { %v704_v5 = vmul.f32 %v1535_v2, %v1519_v37  ;;  %v768_v6 = vpop.xlane.xlu2 %767 }
 0x749   :  { %v706_v9 = vpack.c.bf16 %v705_v3, %v704_v5  ;;  %v1434_v5 = vld [vmem:[%s2030_s15] sm:$0xff] }
 0x74b   :  { %1390 = vmatmul.msk.bf16.vlgmr.msra.gmra.mxu3 %vm219_vm1, %v706_v9 }
 0x74e   :  { %v841_v10 = vpop.xlane.xlu0 %840 }
 0x74f   :  { %1536 = vrcp.f32 %v841_v10  ;;  %v838_v11 = vpop.xlane.xlu2 %837 }
 0x750   :  { %1538 = vrcp.f32 %v838_v11 }
 0x751   :  { %1540 = vrcp.f32 %v771_v4  ;;  %v1435_v4 = vld [vmem:[%s2030_s15 + $0x8] sm:$0xff] }
 0x752   :  { %1542 = vrcp.f32 %v768_v6  ;;  %967 = vmatpush.bf16.msrb.mxu3 %v1435_v4 }
 0x755   :  { %v1537_v12 = vpop.eup %1536 }
 0x756   :  { %v1539_v16 = vpop.eup %1538  ;;  %v845_v17 = vmul.f32 %v1537_v12, %v1525_v49  ;;  %968 = vmatpush.bf16.msrb.mxu3 %v1434_v5 }
 0x757   :  { %v844_v18 = vmul.f32 %v1539_v16, %v1527_v50  ;;  %v848_v19 = vpop.permute.xlu2 %847  ;;  %v1541_v22 = vpop.eup %1540 }
 0x758   :  { %860 = vmatpush.bf16.msra.mxu1 %v848_v19  ;;  %v1543_v23 = vpop.eup %1542  ;;  %v775_v24 = vmul.f32 %v1541_v22, %v1521_v13 }
 0x759   :  { %v846_v20 = vpack.c.bf16 %v845_v17, %v844_v18  ;;  %v774_v26 = vmul.f32 %v1543_v23, %v1523_v43 }
 0x75b   :  { %1392 = vmatmul.msk.bf16.vlgmr.msra.gmra.mxu1 %vm219_vm1, %v846_v20  ;;  %v776_v28 = vpack.c.bf16 %v775_v24, %v774_v26 }
 0x761   :  { %v778_v27 = vpop.permute.xlu0 %777 }
 0x762   :  { %790 = vmatpush.bf16.msra.mxu0 %v778_v27 }
 0x765   :  { %1391 = vmatmul.msk.bf16.vlgmr.msra.gmra.mxu0 %vm219_vm1, %v776_v28 }
 0x78c   :  { %v638_v29 = vpop.xlane.xlu0 %637 }
 0x78d   :  { %1544 = vrcp.f32 %v638_v29 }
 0x790   :  { %v641_v30 = vpop.xlane.xlu2 %640 }
 0x791   :  { %1546 = vrcp.f32 %v641_v30 }
 0x793   :  { %v1545_v31 = vpop.eup %1544 }
 0x794   :  { %v644_v33 = vmul.f32 %v1545_v31, %v1529_v59 }
 0x797   :  { %v1547_v32 = vpop.eup %1546 }
 0x798   :  { %v645_v34 = vmul.f32 %v1547_v32, %v1531_v62 }
 0x79a   :  { %v646_v35 = vpack.c.bf16 %v645_v34, %v644_v33 }
 0x79c   :  { %1389 = vmatmul.msk.bf16.vlgmr.msra.gmra.mxu2 %vm219_vm1, %v646_v35 }
 0x7ce   :  { %v722_v36 = vpop.f32.mrf.mxu3 }
 0x7cf   :  { %729 = vrot.lane.b32.xlu1 %v722_v36, %s1587_s1 }
 0x7d6   :  { %v724_v37 = vpop.f32.mrf.mxu3 }
 0x7d7   :  { %731 = vrot.lane.b32.xlu0 %v724_v37, %s1587_s1 }
 0x7d8   :  { %v862_v38 = vpop.f32.mrf.mxu1 }
 0x7df   :  { %869 = vrot.lane.b32.xlu0 %v862_v38, %s1589_s23 }
 0x7e0   :  { %v864_v41 = vpop.f32.mrf.mxu1 }
 0x7e2   :  { %v792_v39 = vpop.f32.mrf.mxu0 }
 0x7e3   :  { %799 = vrot.lane.b32.xlu2 %v792_v39, %s1588_s22 }
 0x7ea   :  { %v794_v40 = vpop.f32.mrf.mxu0 }
 0x7eb   :  { %801 = vrot.lane.b32.xlu1 %v794_v40, %s1588_s22 }
 0x7f3   :  { %871 = vrot.lane.b32.xlu1 %v864_v41, %s1589_s23 }
 0x81f   :  { %v660_v13 = vpop.f32.mrf.mxu2 }
 0x820   :  { %665 = vst.msk [vmem:[#allocation2] sm:$0xff] %vm261_vm2, %v660_v13 }
 0x827   :  { %v662_v42 = vpop.f32.mrf.mxu2 }
 0x828   :  { %666 = vst.msk [vmem:[#allocation2 + $0x8] sm:$0xff] %vm261_vm2, %v662_v42 }
 0x83d   :  { %v800_v44 = vpop.permute.xlu2 %799 }
 0x841   :  { %v730_v43 = vpop.permute.xlu1 %729 }
 0x842   :  { %735 = vst.msk [vmem:[#allocation2] sm:$0xff] %vm332_vm3, %v730_v43 }
 0x843   :  { %805 = vst.msk [vmem:[#allocation2] sm:$0xff] %vm403_vm4, %v800_v44 }
 0x849   :  { %v732_v48 = vpop.permute.xlu0 %731 }
 0x84a   :  { %736 = vst.msk [vmem:[#allocation2 + $0x8] sm:$0xff] %vm332_vm3, %v732_v48 }
 0x851   :  { %v870_v49 = vpop.permute.xlu0 %869 }
 0x852   :  { %875 = vst.msk [vmem:[#allocation2] sm:$0xff] %vm474_vm5, %v870_v49 }
 0x859   :  { %v877_v52 = vld [vmem:[#allocation2] sm:$0xff] }
 0x85a   :  { %v883_v54 = vadd.f32 %v1477_v51, %v877_v52 }
 0x85c   :  { %v885_v55 = vmax.f32 %v883_v54, 0.0 }
 0x85d   :  { %v802_v50 = vpop.permute.xlu1 %801 }
 0x85e   :  { %806 = vst.msk [vmem:[#allocation2 + $0x8] sm:$0xff] %vm403_vm4, %v802_v50  ;;  %v891_v59 = vmul.f32 %v1478_v56, %v885_v55 }
 0x860   :  { %v897_v0 = vadd.f32 %v1479_v60, %v891_v59 }
 0x862   :  { %v1908_v21 = vadd.f32 %v897_v0, %v1816_v7 }
 0x865   :  { %v872_v53 = vpop.permute.xlu1 %871 }
 0x866   :  { %876 = vst.msk [vmem:[#allocation2 + $0x8] sm:$0xff] %vm474_vm5, %v872_v53 }
 0x86d   :  { %v878_v57 = vld [vmem:[#allocation2 + $0x8] sm:$0xff] }
 0x86e   :  { %v884_v58 = vadd.f32 %v1477_v51, %v878_v57 }
 0x870   :  { %v886_v62 = vmax.f32 %v884_v58, 0.0 }
 0x872   :  { %v892_v63 = vmul.f32 %v1478_v56, %v886_v62 }
 0x874   :  { %v898_v1 = vadd.f32 %v1479_v60, %v892_v63 }
 0x876   :  { %v1911_v2 = vadd.f32 %v898_v1, %v1818_v8 }
 0x878   :  { %v901_v3 = vpack.c.bf16 %v1911_v2, %v1908_v21 }
 0x87a   :  { %1401 = vmatmul.msk.bf16.vlgmr.msrb.gmra.mxu2 %vm110_vm0, %v901_v3 }
 0x8fd   :  { %v930_v7 = vpop.f32.mrf.mxu2 }
 0x8fe   :  { %v935_v6 = vpack.c.bf16 %v930_v7, %v930_v7 }
 0x900   :  { %v943_v10 = vunpack.c.l.b16 %v935_v6 }
 0x905   :  { %v932_v9 = vpop.f32.mrf.mxu2 }
 0x906   :  { %v936_v8 = vpack.c.bf16 %v932_v9, %v932_v9 }
 0x908   :  { %v944_v11 = vunpack.c.l.b16 %v936_v8 }
 0x90a   :  { %v1922_v12 = vpack.c.b16 %v944_v11, %v943_v10 }
 0x90c   :  { %1410 = vmatmul.msk.bf16.vlgmr.msrb.gmra.mxu3 %vm110_vm0, %v1922_v12  ;;  %1060 = vmatpush.bf16.msrb.mxu0 %v1922_v12 }
 0x98f   :  { %v970_v16 = vpop.f32.mrf.mxu3 }
 0x990   :  { %1210 = vperm.xlu2 %1464, %v970_v16   ;;  %1140 = vperm.xlu0 %1466, %v970_v16  }
 0x997   :  { %v972_v17 = vpop.f32.mrf.mxu3 }
 0x998   :  { %1467 = vset.pattern.permute.xlu2 %v1581_v14  ;;  %1470 = vset.pattern.permute.xlu0 %v1581_v14 }
 0x999   :  { %1144 = vperm.xlu1 %1463, %v972_v17   ;;  %1070 = vperm.xlu2 %1467, %v970_v16  }
 0x99a   :  { %1074 = vperm.xlu0 %1470, %v972_v17  }
 0x9a1   :  { %1469 = vset.pattern.permute.xlu1 %v1583_v25  ;;  %1468 = vset.pattern.permute.xlu2 %v1582_v15 }
 0x9a2   :  { %1214 = vperm.xlu1 %1469, %v972_v17   ;;  %1009 = vperm.xlu2 %1468, %v970_v16  }
 0x9a3   :  { %1471 = vset.pattern.permute.xlu0 %v1583_v25 }
 0x9aa   :  { %1014 = vperm.xlu2 %1468, %v972_v17  }
 0x9b2   :  { %1179 = vrot.lane.b32.xlu2 %v1922_v12, %s1585_s5 }
 0x9d7   :  { %975 = vxpose.xlu1.b32.start [1/2] (short) (narrow) %v970_v16, 8 }
 0x9df   :  { %976 = vxpose.xlu1.b32.end [2/2] (short) (narrow) %v972_v17, 8 }
 0x9ea   :  { %v1211_v18 = vpop.permute.xlu2 %1210 }
 0x9f3   :  { %v1071_v19 = vpop.permute.xlu2 %1070 }
 0x9fc   :  { %v1010_v14 = vpop.permute.xlu2 %1009 }
 0xa02   :  { %v1141_v26 = vpop.permute.xlu0 %1140 }
 0xa04   :  { %v1015_v20 = vpop.permute.xlu2 %1014 }
 0xa0b   :  { %v1145_v23 = vpop.permute.xlu1 %1144 }
 0xa0c   :  { %v1180_v22 = vpop.permute.xlu2 %1179  ;;  %v1075_v42 = vpop.permute.xlu0 %1074 }
 0xa0d   :  { %1192 = vmatpush.bf16.msra.mxu2 %v1180_v22 }
 0xa14   :  { %v1215_v24 = vpop.permute.xlu1 %1214 }
 0xa7b   :  { %v991_v15 = vpop.trf.xlu1 }
 0xa7c   :  { %v1017_v27 = vperm.slane %v991_v15, 4  ;;  %v1077_v28 = vperm.slane %v991_v15, 5  ;;  %v1147_v29 = vperm.slane %v991_v15, 6  ;;  %v1217_v25 = vperm.slane %v991_v15, 7 }
 0xa7e   :  { %v1148_v30 = vadd.f32 %v1147_v29, %v1141_v26  ;;  %v1078_v31 = vadd.f32 %v1077_v28, %v1071_v19  ;;  %v1018_v32 = vadd.f32 %v1017_v27, %v1010_v14  ;;  %v1218_v33 = vadd.f32 %v1217_v25, %v1211_v18 }
 0xa7f   :  { %v1149_v34 = vadd.f32 %v1147_v29, %v1145_v23  ;;  %v1079_v46 = vadd.f32 %v1077_v28, %v1075_v42  ;;  %v1219_v53 = vadd.f32 %v1217_v25, %v1215_v24  ;;  %v1019_v60 = vadd.f32 %v1017_v27, %v1015_v20 }
 0xa80   :  { %v1150_v35 = vmul.f32 0.2, %v1148_v30  ;;  %v1080_v36 = vmul.f32 0.2, %v1078_v31  ;;  %v1020_v37 = vmul.f32 0.2, %v1018_v32 }
 0xa81   :  { %v1220_v41 = vmul.f32 0.2, %v1218_v33  ;;  %v1151_v13 = vmul.f32 0.2, %v1149_v34  ;;  %v1081_v55 = vmul.f32 0.2, %v1079_v46 }
 0xa82   :  { %v1152_v38 = vmax.f32 %v1148_v30, %v1150_v35  ;;  %v1082_v39 = vmax.f32 %v1078_v31, %v1080_v36  ;;  %v1022_v40 = vmax.f32 %v1018_v32, %v1020_v37  ;;  %v1221_v57 = vmul.f32 0.2, %v1219_v53 }
 0xa83   :  { %v1222_v51 = vmax.f32 %v1218_v33, %v1220_v41  ;;  %v1153_v52 = vmax.f32 %v1149_v34, %v1151_v13  ;;  %v1083_v59 = vmax.f32 %v1079_v46, %v1081_v55  ;;  %v1021_v1 = vmul.f32 0.2, %v1019_v60 }
 0xa84   :  { %v1154_v43 = vadd.f32 %v1152_v38, %v1741_v47  ;;  %v1084_v44 = vadd.f32 %v1082_v39, %v1741_v47  ;;  %v1937_v45 = vadd.f32 %v1022_v40, %v1741_v47  ;;  %v1223_v63 = vmax.f32 %v1219_v53, %v1221_v57 }
 0xa85   :  { %v1224_v54 = vadd.f32 %v1222_v51, %v1741_v47  ;;  %v1155_v56 = vadd.f32 %v1153_v52, %v1746_v61  ;;  %v1085_v0 = vadd.f32 %v1083_v59, %v1746_v61  ;;  %v1023_v4 = vmax.f32 %v1019_v60, %v1021_v1 }
 0xa86   :  { %v1156_v48 = vsel %vm219_vm1, %v1154_v43, -inf  ;;  %v1086_v49 = vsel %vm219_vm1, %v1084_v44, -inf  ;;  %v1026_v50 = vsel %vm219_vm1, %v1937_v45, -inf  ;;  %v1225_v3 = vadd.f32 %v1223_v63, %v1746_v61 }
 0xa87   :  { %1157 = vmax.xlane.f32.xlu0 %v1156_v48  ;;  %1087 = vmax.xlane.f32.xlu1 %v1086_v49  ;;  %v1226_v58 = vsel %vm219_vm1, %v1224_v54, -inf  ;;  %v1159_v62 = vsel %vm219_vm1, %v1155_v56, -inf  ;;  %v1089_v47 = vsel %vm219_vm1, %v1085_v0, -inf  ;;  %v1025_v7 = vadd.f32 %v1023_v4, %v1746_v61 }
 0xa88   :  { %1027 = vmax.xlane.f32.xlu2 %v1026_v50  ;;  %v1229_v5 = vsel %vm219_vm1, %v1225_v3, -inf }
 0xa89   :  { %v1029_v6 = vsel %vm219_vm1, %v1025_v7, -inf }
 0xa8f   :  { %1227 = vmax.xlane.f32.xlu0 %v1226_v58 }
 0xa90   :  { %1160 = vmax.xlane.f32.xlu2 %v1159_v62 }
 0xa97   :  { %1090 = vmax.xlane.f32.xlu0 %v1089_v47 }
 0xa98   :  { %1230 = vmax.xlane.f32.xlu2 %v1229_v5 }
 0xa9f   :  { %1030 = vmax.xlane.f32.xlu0 %v1029_v6 }
 0xafa   :  { %v1158_v9 = vpop.xlane.xlu0 %1157  ;;  %v1088_v16 = vpop.xlane.xlu1 %1087 }
 0xafb   :  { %v1162_v8 = vsub.f32 %v1154_v43, %v1158_v9  ;;  %v1028_v10 = vpop.xlane.xlu2 %1027  ;;  %v1092_v22 = vsub.f32 %v1084_v44, %v1088_v16 }
 0xafc   :  { %v1032_v43 = vsub.f32 %v1937_v45, %v1028_v10 }
 0xafd   :  { %v1164_v11 = vmul.f32 1.442695, %v1162_v8  ;;  %v1094_v61 = vmul.f32 1.442695, %v1092_v22 }
 0xafe   :  { %v1034_v44 = vmul.f32 1.442695, %v1032_v43 }
 0xaff   :  { %1548 = vpow2.f32 %v1164_v11 }
 0xb02   :  { %v1228_v17 = vpop.xlane.xlu0 %1227 }
 0xb03   :  { %v1232_v18 = vsub.f32 %v1224_v54, %v1228_v17  ;;  %v1161_v19 = vpop.xlane.xlu2 %1160 }
 0xb04   :  { %v1163_v14 = vsub.f32 %v1155_v56, %v1161_v19 }
 0xb05   :  { %v1549_v20 = vpop.eup %1548  ;;  %v1234_v23 = vmul.f32 1.442695, %v1232_v18 }
 0xb06   :  { %v1166_v24 = vmul.f32 1.442695, %v1163_v14  ;;  %v1168_v26 = vsel %vm219_vm1, %v1549_v20, 0.0 }
 0xb07   :  { %1550 = vpow2.f32 %v1234_v23  ;;  %1169 = vadd.xlane.f32.xlu2 %v1168_v26 }
 0xb08   :  { %1552 = vpow2.f32 %v1166_v24 }
 0xb09   :  { %1554 = vpow2.f32 %v1094_v61 }
 0xb0a   :  { %v1091_v15 = vpop.xlane.xlu0 %1090 }
 0xb0b   :  { %v1231_v27 = vpop.xlane.xlu2 %1230  ;;  %v1093_v30 = vsub.f32 %v1085_v0, %v1091_v15 }
 0xb0c   :  { %v1233_v28 = vsub.f32 %v1225_v3, %v1231_v27  ;;  %v1437_v27 = vld [vmem:[%s2035_s19 + $0x8] sm:$0xff] }
 0xb0d   :  { %v1954_v29 = vpop.eup %1550  ;;  %v1096_v34 = vmul.f32 1.442695, %v1093_v30  ;;  %1333 = vmatpush.bf16.msra.mxu0 %v1437_v27 }
 0xb0e   :  { %v1553_v25 = vpop.eup %1552  ;;  %v1236_v31 = vmul.f32 1.442695, %v1233_v28  ;;  %v1238_v32 = vsel %vm219_vm1, %v1954_v29, 0.0  ;;  %v1436_v28 = vld [vmem:[%s2035_s19] sm:$0xff] }
 0xb0f   :  { %1239 = vadd.xlane.f32.xlu2 %v1238_v32  ;;  %v1171_v33 = vsel %vm219_vm1, %v1553_v25, 0.0  ;;  %v1555_v35 = vpop.eup %1554 }
 0xb10   :  { %1556 = vpow2.f32 %v1236_v31  ;;  %1172 = vadd.xlane.f32.xlu0 %v1171_v33  ;;  %v1098_v37 = vsel %vm219_vm1, %v1555_v35, 0.0 }
 0xb11   :  { %1558 = vpow2.f32 %v1096_v34  ;;  %1334 = vmatpush.bf16.msra.mxu0 %v1436_v28 }
 0xb12   :  { %v1031_v41 = vpop.xlane.xlu0 %1030 }
 0xb13   :  { %v1033_v13 = vsub.f32 %v1025_v7, %v1031_v41 }
 0xb15   :  { %v1036_v42 = vmul.f32 1.442695, %v1033_v13  ;;  %v1482_v13 = vld [vmem:[%s2033_s18] ss:$0 sm:$0xff] }
 0xb16   :  { %v1557_v36 = vpop.eup %1556 }
 0xb17   :  { %1099 = vadd.xlane.f32.xlu2 %v1098_v37  ;;  %v1241_v38 = vsel %vm219_vm1, %v1557_v36, 0.0  ;;  %v1559_v39 = vpop.eup %1558  ;;  %1560 = vpow2.f32 %v1036_v42 }
 0xb18   :  { %1242 = vadd.xlane.f32.xlu0 %v1241_v38  ;;  %v1101_v40 = vsel %vm219_vm1, %v1559_v39, 0.0  ;;  %1562 = vpow2.f32 %v1034_v44  ;;  %v1481_v38 = vld [vmem:[%s2032_s17] ss:$0 sm:$0xff] }
 0xb1d   :  { %v1561_v46 = vpop.eup %1560 }
 0xb1e   :  { %v1041_v48 = vsel %vm219_vm1, %v1561_v46, 0.0  ;;  %v1563_v49 = vpop.eup %1562 }
 0xb1f   :  { %v1038_v50 = vsel %vm219_vm1, %v1563_v49, 0.0 }
 0xb20   :  { %1102 = vadd.xlane.f32.xlu0 %v1101_v40 }
 0xb2f   :  { %1109 = vrot.lane.b32.xlu2 %v1922_v12, %s1584_s4 }
 0xb34   :  { %1249 = vrot.lane.b32.xlu0 %v1922_v12, %s1586_s30 }
 0xb58   :  { %1042 = vadd.xlane.f32.xlu2 %v1041_v48 }
 0xb5e   :  { %1039 = vadd.xlane.f32.xlu0 %v1038_v50 }
 0xb7a   :  { %v1170_v51 = vpop.xlane.xlu2 %1169 }
 0xb7b   :  { %1564 = vrcp.f32 %v1170_v51  ;;  %v1483_v51 = vld [vmem:[%s2034_s20] ss:$0 sm:$0xff] }
 0xb81   :  { %v1565_v53 = vpop.eup %1564 }
 0xb82   :  { %v1240_v52 = vpop.xlane.xlu2 %1239  ;;  %v1176_v45 = vmul.f32 %v1565_v53, %v1549_v20 }
 0xb83   :  { %v1173_v12 = vpop.xlane.xlu0 %1172 }
 0xb84   :  { %1566 = vrcp.f32 %v1173_v12 }
 0xb8a   :  { %v1567_v54 = vpop.eup %1566  ;;  %v1100_v55 = vpop.xlane.xlu2 %1099 }
 0xb8b   :  { %v1177_v56 = vmul.f32 %v1567_v54, %v1553_v25  ;;  %v1243_v57 = vpop.xlane.xlu0 %1242  ;;  %1568 = vrcp.f32 %v1100_v55 }
 0xb8d   :  { %v1178_v58 = vpack.c.bf16 %v1177_v56, %v1176_v45 }
 0xb8f   :  { %1413 = vmatmul.msk.bf16.vlgmr.msra.gmra.mxu2 %vm219_vm1, %v1178_v58 }
 0xb91   :  { %v1569_v62 = vpop.eup %1568 }
 0xb92   :  { %v1110_v59 = vpop.permute.xlu2 %1109  ;;  %v1106_v0 = vmul.f32 %v1569_v62, %v1555_v35 }
 0xb93   :  { %v1103_v60 = vpop.xlane.xlu0 %1102  ;;  %1122 = vmatpush.bf16.msrb.mxu1 %v1110_v59 }
 0xb94   :  { %1570 = vrcp.f32 %v1103_v60 }
 0xb95   :  { %1572 = vrcp.f32 %v1243_v57 }
 0xb96   :  { %1574 = vrcp.f32 %v1240_v52 }
 0xb9a   :  { %v1571_v63 = vpop.eup %1570 }
 0xb9b   :  { %v1107_v1 = vmul.f32 %v1571_v63, %v1559_v39  ;;  %v1573_v47 = vpop.eup %1572 }
 0xb9c   :  { %v1575_v4 = vpop.eup %1574  ;;  %v1247_v5 = vmul.f32 %v1573_v47, %v1557_v36 }
 0xb9d   :  { %v1108_v3 = vpack.c.bf16 %v1107_v1, %v1106_v0  ;;  %v1246_v7 = vmul.f32 %v1575_v4, %v1954_v29 }
 0xb9f   :  { %1412 = vmatmul.msk.bf16.vlgmr.msrb.gmra.mxu1 %vm219_vm1, %v1108_v3  ;;  %v1248_v9 = vpack.c.bf16 %v1247_v5, %v1246_v7 }
 0xba6   :  { %v1250_v6 = vpop.permute.xlu0 %1249 }
 0xba7   :  { %1262 = vmatpush.bf16.msra.mxu3 %v1250_v6 }
 0xbaa   :  { %1414 = vmatmul.msk.bf16.vlgmr.msra.gmra.mxu3 %vm219_vm1, %v1248_v9 }
 0xbcb   :  { %v1043_v8 = vpop.xlane.xlu2 %1042 }
 0xbcc   :  { %1576 = vrcp.f32 %v1043_v8 }
 0xbd1   :  { %v1040_v10 = vpop.xlane.xlu0 %1039 }
 0xbd2   :  { %1578 = vrcp.f32 %v1040_v10  ;;  %v1577_v11 = vpop.eup %1576 }
 0xbd3   :  { %v1047_v17 = vmul.f32 %v1577_v11, %v1561_v46 }
 0xbd8   :  { %v1579_v16 = vpop.eup %1578 }
 0xbd9   :  { %v1046_v18 = vmul.f32 %v1579_v16, %v1563_v49 }
 0xbdb   :  { %v1048_v19 = vpack.c.bf16 %v1047_v17, %v1046_v18 }
 0xbdd   :  { %1411 = vmatmul.msk.bf16.vlgmr.msrb.gmra.mxu0 %vm219_vm1, %v1048_v19 }
 0xc12   :  { %v1194_v14 = vpop.f32.mrf.mxu2 }
 0xc13   :  { %1201 = vrot.lane.b32.xlu2 %v1194_v14, %s1588_s22 }
 0xc1a   :  { %v1196_v22 = vpop.f32.mrf.mxu2 }
 0xc1c   :  { %v1124_v20 = vpop.f32.mrf.mxu1 }
 0xc1d   :  { %1131 = vrot.lane.b32.xlu1 %v1124_v20, %s1587_s1 }
 0xc24   :  { %v1126_v23 = vpop.f32.mrf.mxu1 }
 0xc25   :  { %1203 = vrot.lane.b32.xlu1 %v1196_v22, %s1588_s22  ;;  %1133 = vrot.lane.b32.xlu0 %v1126_v23, %s1587_s1 }
 0xc2d   :  { %v1264_v24 = vpop.f32.mrf.mxu3 }
 0xc2e   :  { %1271 = vrot.lane.b32.xlu0 %v1264_v24, %s1589_s23 }
 0xc35   :  { %v1266_v26 = vpop.f32.mrf.mxu3 }
 0xc36   :  { %1273 = vrot.lane.b32.xlu1 %v1266_v26, %s1589_s23  ;;  %s2053_s23 = sld [smem:[#allocation9_spill]] }
 0xc3c   :  { %v1480_v33 = vld [vmem:[%s2053_s23] ss:$0 sm:$0xff] }
 0xc5a   :  { %v1062_v61 = vpop.f32.mrf.mxu0 }
 0xc5b   :  { %1067 = vst.msk [vmem:[#allocation2] sm:$0xff] %vm261_vm2, %v1062_v61 }
 0xc62   :  { %v1064_v15 = vpop.f32.mrf.mxu0 }
 0xc63   :  { %1068 = vst.msk [vmem:[#allocation2 + $0x8] sm:$0xff] %vm261_vm2, %v1064_v15 }
 0xc6d   :  { %v1202_v25 = vpop.permute.xlu2 %1201 }
 0xc8f   :  { %v1132_v29 = vpop.permute.xlu1 %1131 }
 0xc90   :  { %1137 = vst.msk [vmem:[#allocation2] sm:$0xff] %vm332_vm3, %v1132_v29 }
 0xc91   :  { %1207 = vst.msk [vmem:[#allocation2] sm:$0xff] %vm403_vm4, %v1202_v25 }
 0xc97   :  { %v1204_v30 = vpop.permute.xlu1 %1203  ;;  %v1134_v31 = vpop.permute.xlu0 %1133 }
 0xc98   :  { %1138 = vst.msk [vmem:[#allocation2 + $0x8] sm:$0xff] %vm332_vm3, %v1134_v31 }
 0xc99   :  { %1208 = vst.msk [vmem:[#allocation2 + $0x8] sm:$0xff] %vm403_vm4, %v1204_v30 }
 0xca0   :  { %v1272_v32 = vpop.permute.xlu0 %1271 }
 0xca1   :  { %1277 = vst.msk [vmem:[#allocation2] sm:$0xff] %vm474_vm5, %v1272_v32 }
 0xca8   :  { %v1274_v34 = vpop.permute.xlu1 %1273  ;;  %v1279_v35 = vld [vmem:[#allocation2] sm:$0xff] }
 0xca9   :  { %1278 = vst.msk [vmem:[#allocation2 + $0x8] sm:$0xff] %vm474_vm5, %v1274_v34  ;;  %v1285_v36 = vadd.f32 %v1480_v33, %v1279_v35 }
 0xcab   :  { %v1287_v37 = vmax.f32 %v1285_v36, 0.0 }
 0xcad   :  { %v1293_v41 = vmul.f32 %v1481_v38, %v1287_v37 }
 0xcaf   :  { %v1299_v44 = vadd.f32 %v1482_v13, %v1293_v41 }
 0xcb0   :  { %v1280_v39 = vld [vmem:[#allocation2 + $0x8] sm:$0xff] }
 0xcb1   :  { %v1286_v40 = vadd.f32 %v1480_v33, %v1280_v39  ;;  %v1301_v48 = vadd.f32 %v1299_v44, %v1908_v21 }
 0xcb3   :  { %v1288_v42 = vmax.f32 %v1286_v40, 0.0 }
 0xcb5   :  { %v1294_v43 = vmul.f32 %v1481_v38, %v1288_v42 }
 0xcb7   :  { %v1300_v46 = vadd.f32 %v1482_v13, %v1294_v43 }
 0xcb9   :  { %v1302_v49 = vadd.f32 %v1300_v46, %v1911_v2 }
 0xcbb   :  { %v1303_v50 = vpack.c.bf16 %v1302_v49, %v1301_v48 }
 0xcbd   :  { %1423 = vmatmul.msk.bf16.vlgmr.msra.gmra.mxu0 %vm110_vm0, %v1303_v50 }
 0xd3a   :  { %v1336_v52 = vpop.f32.mrf.mxu0 }
 0xd3b   :  { %v1337_v12 = vadd.f32 %v1483_v51, %v1336_v52 }
 0xd3d   :  { %1341 = vst [vmem:[%s2036_s21] sm:$0xff] %v1337_v12 }
 0xd42   :  { %v1338_v53 = vpop.f32.mrf.mxu0 }
 0xd43   :  { %v1339_v54 = vadd.f32 %v1483_v51, %v1338_v53 }
 0xd45   :  { %1342 = vst [vmem:[%s2036_s21 + $0x8] sm:$0xff] %v1339_v54 }

</bundles_post_ra>
